<compile_context>
chip_gen: v5e
topology: v5e:2x2
jax: 0.10.0
libtpu: 0.0.40
codegen_flags: <defaults>
</compile_context>

<pallas_src>
import functools

import jax
import jax.numpy as jnp
from jax import lax
from jax.experimental import pallas as pl
from jax.experimental.pallas import tpu as pltpu


# ---------------------------------------------------------------------------
# Attention core: batched-head attention + output projection + residual + LN,
# computed entirely in registers / VMEM.  q, k, v are already projected.
# ---------------------------------------------------------------------------
def _mha_core(H, matmul_dtype, q, k, v, bias, wcT, bc, lnw, lnb):
    T, C = q.shape
    S = k.shape[0]
    D = C // H

    residual = q                                        # as in the reference

    # (T, C) -> (H, T, D) etc., then one batched contraction over heads.
    qh = q.reshape(T, H, D).transpose(1, 0, 2)
    kh = k.reshape(S, H, D).transpose(1, 0, 2)
    vh = v.reshape(S, H, D).transpose(1, 0, 2)

    # reference: attn = q @ k^T / (embed_dim ** -0.5)  ==  q @ k^T * sqrt(C)
    scale_mul = jnp.float32(C) ** 0.5
    scores = lax.dot_general(
        qh.astype(matmul_dtype), kh.astype(matmul_dtype),
        dimension_numbers=(((2,), (2,)), ((0,), (0,))),
        preferred_element_type=jnp.float32) * scale_mul
    scores = scores + bias[None, :, :]                  # additive -inf mask, one add

    # softmax(dim=-1) in f32; reciprocal on the EUP slot
    m = jnp.max(scores, axis=-1, keepdims=True)
    e = jnp.exp(scores - m)
    denom = jnp.sum(e, axis=-1, keepdims=True)
    probs = e * pl.reciprocal(denom, approx=True)       # (H, T, S)

    ctx = lax.dot_general(
        probs.astype(matmul_dtype), vh.astype(matmul_dtype),
        dimension_numbers=(((2,), (1,)), ((0,), (0,))),
        preferred_element_type=jnp.float32)             # (H, T, D)
    ctx = ctx.transpose(1, 0, 2).reshape(T, C)          # 'b n l d -> b l (n d)'

    # output projection + residual + LayerNorm(eps=1e-6)
    proj = jnp.dot(ctx.astype(matmul_dtype), wcT.astype(matmul_dtype),
                   preferred_element_type=jnp.float32) + bc
    x = proj + residual
    mean = jnp.mean(x, axis=-1, keepdims=True)
    var = jnp.mean((x - mean) ** 2, axis=-1, keepdims=True)
    out = (x - mean) * lax.rsqrt(var + jnp.float32(1e-6)) * lnw + lnb
    return out, probs


# ---------------------------------------------------------------------------
# Fused DecoderLayer kernel: one grid step = one batch element.
# self-attn -> cross-attn -> fc; attention maps stored once each.
# ---------------------------------------------------------------------------
def _decoder_layer_kernel(H, matmul_dtype,
                          tar_ref, memo_ref, bias_ref,
                          s_wqkvT_ref, s_wcT_ref, s_bc_ref, s_lnw_ref, s_lnb_ref,
                          c_wqT_ref, c_wkvT_ref, c_wcT_ref, c_bc_ref,
                          c_lnw_ref, c_lnb_ref,
                          fc_wT_ref, fc_b_ref,
                          y_ref, attn_self_ref, attn_cross_ref):
    tar = tar_ref[0]            # (T, C)
    memo = memo_ref[0]          # (S, C)
    bias = bias_ref[0]          # (T, T) additive mask (0 or -inf)
    C = tar.shape[-1]
    md = matmul_dtype

    # ---- self attention (q = k = v = tar): fused (C, 3C) projection ----
    qkv = jnp.dot(tar.astype(md), s_wqkvT_ref[...].astype(md),
                  preferred_element_type=jnp.float32)
    y1, p_self = _mha_core(
        H, md, qkv[:, :C], qkv[:, C:2 * C], qkv[:, 2 * C:], bias,
        s_wcT_ref[...], s_bc_ref[...], s_lnw_ref[...], s_lnb_ref[...])
    attn_self_ref[0] = p_self                       # single store per grid step

    # ---- cross attention (q = y1, k = v = memo): fused (C, 2C) kv projection ----
    q2 = jnp.dot(y1.astype(md), c_wqT_ref[...].astype(md),
                 preferred_element_type=jnp.float32)
    kv2 = jnp.dot(memo.astype(md), c_wkvT_ref[...].astype(md),
                  preferred_element_type=jnp.float32)
    y2, p_cross = _mha_core(
        H, md, q2, kv2[:, :C], kv2[:, C:], bias,
        c_wcT_ref[...], c_bc_ref[...], c_lnw_ref[...], c_lnb_ref[...])
    attn_cross_ref[0] = p_cross                     # single store per grid step

    # ---- final fc: y = y2 @ W^T + b ----
    y_ref[0] = (jnp.dot(y2.astype(md), fc_wT_ref[...].astype(md),
                        preferred_element_type=jnp.float32) + fc_b_ref[...])


def decoder_layer(tar, memo, self_attn_mask, params, num_heads,
                  matmul_dtype=jnp.float32):
    """Fused DecoderLayer forward. Returns (y, attn_self, attn_cross)."""
    B, T, C = tar.shape
    S = memo.shape[1]
    H = num_heads
    assert S == T, "reference applies self_attn_mask[:T,:T] to cross attention"

    # Additive mask precomputed once (reference: masked_fill(mask==0, -inf)).
    # TODO(synk): -inf + softmax gives NaN for fully-masked rows, exactly like
    # the PyTorch reference; causal masks never hit this.
    bias = jnp.where(self_attn_mask == 0.0,
                     jnp.float32(-jnp.inf), jnp.float32(0.0))

    kernel = functools.partial(_decoder_layer_kernel, H, matmul_dtype)

    seq_spec = lambda L, W: pl.BlockSpec((1, L, W), lambda b: (b, 0, 0))
    # Constant index_map => these blocks are not re-fetched across the batch grid.
    w_spec = lambda r, c: pl.BlockSpec((r, c), lambda b: (0, 0))

    p_s, p_c = params["self_attn"], params["cross_attn"]

    y, attn_self, attn_cross = pl.pallas_call(
        kernel,
        grid=(B,),
        in_specs=[
            seq_spec(T, C),                                   # tar
            seq_spec(S, C),                                   # memo
            pl.BlockSpec((1, T, T), lambda b: (b, 0, 0)),     # additive mask
            w_spec(C, 3 * C), w_spec(C, C),                   # self: wqkvT, wcT
            w_spec(1, C), w_spec(1, C), w_spec(1, C),         # self: bc, lnw, lnb
            w_spec(C, C), w_spec(C, 2 * C), w_spec(C, C),     # cross: wqT, wkvT, wcT
            w_spec(1, C), w_spec(1, C), w_spec(1, C),         # cross: bc, lnw, lnb
            w_spec(C, C), w_spec(1, C),                       # fc: wT, b
        ],
        out_specs=[
            seq_spec(T, C),
            pl.BlockSpec((1, H, T, T), lambda b: (b, 0, 0, 0)),
            pl.BlockSpec((1, H, T, S), lambda b: (b, 0, 0, 0)),
        ],
        out_shape=[
            jax.ShapeDtypeStruct((B, T, C), jnp.float32),
            jax.ShapeDtypeStruct((B, H, T, T), jnp.float32),
            jax.ShapeDtypeStruct((B, H, T, S), jnp.float32),
        ],
        compiler_params=pltpu.CompilerParams(
            dimension_semantics=("parallel",)),   # B>=2 -> both v7x TCs busy
    )(tar, memo, bias,
      p_s["wqkvT"], p_s["wcT"], p_s["bc"], p_s["lnw"], p_s["lnb"],
      p_c["wqT"], p_c["wkvT"], p_c["wcT"], p_c["bc"], p_c["lnw"], p_c["lnb"],
      params["fc_wT"], params["fc_b"])
    return y, attn_self, attn_cross


# ---------------------------------------------------------------------------
# Deterministic parameter initialization (synthetic, not a checkpoint load)
# ---------------------------------------------------------------------------
def init_attn_raw(key, C):
    ks = jax.random.split(key, 5)
    std = 0.02
    # torch layout (out, in)
    return dict(
        wq=jax.random.normal(ks[0], (C, C), jnp.float32) * std,
        wk=jax.random.normal(ks[1], (C, C), jnp.float32) * std,
        wv=jax.random.normal(ks[2], (C, C), jnp.float32) * std,
        wc=jax.random.normal(ks[3], (C, C), jnp.float32) * std,
        bc=jax.random.normal(ks[4], (C,), jnp.float32) * std,
        lnw=jnp.ones((C,), jnp.float32),     # torch LayerNorm default affine
        lnb=jnp.zeros((C,), jnp.float32),
    )


def pack_self_attn(r, C):
    return dict(
        wqkvT=jnp.concatenate([r["wq"].T, r["wk"].T, r["wv"].T], axis=1),  # (C,3C)
        wcT=r["wc"].T, bc=r["bc"].reshape(1, C),
        lnw=r["lnw"].reshape(1, C), lnb=r["lnb"].reshape(1, C))


def pack_cross_attn(r, C):
    return dict(
        wqT=r["wq"].T,
        wkvT=jnp.concatenate([r["wk"].T, r["wv"].T], axis=1),              # (C,2C)
        wcT=r["wc"].T, bc=r["bc"].reshape(1, C),
        lnw=r["lnw"].reshape(1, C), lnb=r["lnb"].reshape(1, C))


# ---------------------------------------------------------------------------
# Pure-JAX reference (mirrors the PyTorch module, eval mode) for verification.
# ---------------------------------------------------------------------------
def _mhsa_ref(xq, xkv, mask, r, H):
    B, T, C = xq.shape
    S = xkv.shape[1]
    D = C // H
    q = xq @ r["wq"].T
    k = xkv @ r["wk"].T
    v = xkv @ r["wv"].T
    residual = q
    qh = q.reshape(B, T, H, D).transpose(0, 2, 1, 3)
    kh = k.reshape(B, S, H, D).transpose(0, 2, 1, 3)
    vh = v.reshape(B, S, H, D).transpose(0, 2, 1, 3)
    attn = (qh @ kh.transpose(0, 1, 3, 2)) / (C ** -0.5)
    attn = jnp.where(mask[:, None, :T, :T] == 0, -jnp.inf, attn)
    attn = jax.nn.softmax(attn, axis=-1)
    out = (attn @ vh).transpose(0, 2, 1, 3).reshape(B, T, C)
    x = out @ r["wc"].T + r["bc"] + residual
    mean = x.mean(-1, keepdims=True)
    var = ((x - mean) ** 2).mean(-1, keepdims=True)
    x = (x - mean) / jnp.sqrt(var + 1e-6) * r["lnw"] + r["lnb"]
    return x, attn


def _decoder_ref(tar, memo, mask, rs, rc, fc_w, fc_b, H):
    y, a_s = _mhsa_ref(tar, tar, mask, rs, H)
    y, a_c = _mhsa_ref(y, memo, mask, rc, H)
    return y @ fc_w.T + fc_b, a_s, a_c


if __name__ == "__main__":
    B, T, C, H = 2, 8, 32, 4        # batch, seq, embed_dim, num_heads

    key = jax.random.PRNGKey(0)
    k1, k2, k3, k4, k5 = jax.random.split(key, 5)

    tar = jax.random.normal(k1, (B, T, C), jnp.float32)
    memo = jax.random.normal(k2, (B, T, C), jnp.float32)
    causal = jnp.tril(jnp.ones((T, T), jnp.float32))
    self_attn_mask = jnp.broadcast_to(causal, (B, T, T))

    raw_self = init_attn_raw(k3, C)
    raw_cross = init_attn_raw(k4, C)
    fc_w = jax.random.normal(k5, (C, C), jnp.float32) * 0.02
    fc_b = jnp.zeros((C,), jnp.float32)

    params = {
        "self_attn": pack_self_attn(raw_self, C),
        "cross_attn": pack_cross_attn(raw_cross, C),
        "fc_wT": fc_w.T,
        "fc_b": fc_b.reshape(1, C),
    }

    # matmul_dtype=jnp.bfloat16 is recommended on v6e/v7x for real sizes;
    # f32 default preserves reference numerics at this small test shape.
    y, attn_self, attn_cross = decoder_layer(tar, memo, self_attn_mask, params, H)
    jax.block_until_ready((y, attn_self, attn_cross))

    assert y.shape == (B, T, C)
    assert attn_self.shape == (B, H, T, T)
    assert attn_cross.shape == (B, H, T, T)
    assert bool(jnp.all(jnp.isfinite(y)))

    # Verify against the pure-JAX reference (loose tolerance: approx reciprocal).
    y_ref, a_s_ref, a_c_ref = _decoder_ref(
        tar, memo, self_attn_mask, raw_self, raw_cross, fc_w, fc_b, H)
    assert bool(jnp.allclose(y, y_ref, rtol=1e-2, atol=2e-2))
    assert bool(jnp.allclose(attn_self, a_s_ref, rtol=1e-2, atol=2e-2))
    assert bool(jnp.allclose(attn_cross, a_c_ref, rtol=1e-2, atol=2e-2))

    print("KERNEL_OK")
</pallas_src>

<mosaic_0001>
module attributes {stable_mosaic.version = 11 : i64} {
  func.func @_decoder_layer_kernel(%arg0: i32, %arg1: memref<1x8x32xf32, #tpu.memory_space<vmem>>, %arg2: memref<1x8x32xf32, #tpu.memory_space<vmem>>, %arg3: memref<1x8x8xf32, #tpu.memory_space<vmem>>, %arg4: memref<32x96xf32, #tpu.memory_space<vmem>>, %arg5: memref<32x32xf32, #tpu.memory_space<vmem>>, %arg6: memref<1x32xf32, #tpu.memory_space<vmem>>, %arg7: memref<1x32xf32, #tpu.memory_space<vmem>>, %arg8: memref<1x32xf32, #tpu.memory_space<vmem>>, %arg9: memref<32x32xf32, #tpu.memory_space<vmem>>, %arg10: memref<32x64xf32, #tpu.memory_space<vmem>>, %arg11: memref<32x32xf32, #tpu.memory_space<vmem>>, %arg12: memref<1x32xf32, #tpu.memory_space<vmem>>, %arg13: memref<1x32xf32, #tpu.memory_space<vmem>>, %arg14: memref<1x32xf32, #tpu.memory_space<vmem>>, %arg15: memref<32x32xf32, #tpu.memory_space<vmem>>, %arg16: memref<1x32xf32, #tpu.memory_space<vmem>>, %arg17: memref<1x8x32xf32, #tpu.memory_space<vmem>>, %arg18: memref<1x4x8x8xf32, #tpu.memory_space<vmem>>, %arg19: memref<1x4x8x8xf32, #tpu.memory_space<vmem>>) attributes {dimension_semantics = [#tpu.dimension_semantics<parallel>], iteration_bounds = array<i64: 2>, scalar_prefetch = 0 : i64, scratch_operands = 0 : i64, tpu.core_type = #tpu.core_type<tc>, window_params = [{transform_indices = @transform_0, window_bounds = array<i64: 1, 8, 32>}, {transform_indices = @transform_1, window_bounds = array<i64: 1, 8, 32>}, {transform_indices = @transform_2, window_bounds = array<i64: 1, 8, 8>}, {pipeline_mode = #tpu.pipeline_mode<synchronous>, transform_indices = @transform_3, window_bounds = array<i64: 32, 96>}, {pipeline_mode = #tpu.pipeline_mode<synchronous>, transform_indices = @transform_4, window_bounds = array<i64: 32, 32>}, {pipeline_mode = #tpu.pipeline_mode<synchronous>, transform_indices = @transform_5, window_bounds = array<i64: 1, 32>}, {pipeline_mode = #tpu.pipeline_mode<synchronous>, transform_indices = @transform_6, window_bounds = array<i64: 1, 32>}, {pipeline_mode = #tpu.pipeline_mode<synchronous>, transform_indices = @transform_7, window_bounds = array<i64: 1, 32>}, {pipeline_mode = #tpu.pipeline_mode<synchronous>, transform_indices = @transform_8, window_bounds = array<i64: 32, 32>}, {pipeline_mode = #tpu.pipeline_mode<synchronous>, transform_indices = @transform_9, window_bounds = array<i64: 32, 64>}, {pipeline_mode = #tpu.pipeline_mode<synchronous>, transform_indices = @transform_10, window_bounds = array<i64: 32, 32>}, {pipeline_mode = #tpu.pipeline_mode<synchronous>, transform_indices = @transform_11, window_bounds = array<i64: 1, 32>}, {pipeline_mode = #tpu.pipeline_mode<synchronous>, transform_indices = @transform_12, window_bounds = array<i64: 1, 32>}, {pipeline_mode = #tpu.pipeline_mode<synchronous>, transform_indices = @transform_13, window_bounds = array<i64: 1, 32>}, {pipeline_mode = #tpu.pipeline_mode<synchronous>, transform_indices = @transform_14, window_bounds = array<i64: 32, 32>}, {pipeline_mode = #tpu.pipeline_mode<synchronous>, transform_indices = @transform_15, window_bounds = array<i64: 1, 32>}, {transform_indices = @transform_16, window_bounds = array<i64: 1, 8, 32>}, {transform_indices = @transform_17, window_bounds = array<i64: 1, 4, 8, 8>}, {transform_indices = @transform_18, window_bounds = array<i64: 1, 4, 8, 8>}]} {
    %c0 = arith.constant 0 : index
    %c0_0 = arith.constant 0 : index
    %c0_1 = arith.constant 0 : index
    %0 = vector.load %arg1[%c0, %c0_0, %c0_1] : memref<1x8x32xf32, #tpu.memory_space<vmem>>, vector<1x8x32xf32>
    %1 = vector.shape_cast %0 : vector<1x8x32xf32> to vector<8x32xf32>
    %c0_2 = arith.constant 0 : index
    %c0_3 = arith.constant 0 : index
    %c0_4 = arith.constant 0 : index
    %2 = vector.load %arg2[%c0_2, %c0_3, %c0_4] : memref<1x8x32xf32, #tpu.memory_space<vmem>>, vector<1x8x32xf32>
    %3 = vector.shape_cast %2 : vector<1x8x32xf32> to vector<8x32xf32>
    %c0_5 = arith.constant 0 : index
    %c0_6 = arith.constant 0 : index
    %c0_7 = arith.constant 0 : index
    %4 = vector.load %arg3[%c0_5, %c0_6, %c0_7] : memref<1x8x8xf32, #tpu.memory_space<vmem>>, vector<1x8x8xf32>
    %5 = vector.shape_cast %4 : vector<1x8x8xf32> to vector<8x8xf32>
    %c0_8 = arith.constant 0 : index
    %c0_9 = arith.constant 0 : index
    %6 = vector.load %arg4[%c0_8, %c0_9] : memref<32x96xf32, #tpu.memory_space<vmem>>, vector<32x96xf32>
    %cst = arith.constant dense<0.000000e+00> : vector<8x96xf32>
    %7 = tpu.matmul %1, %6, %cst {dimension_numbers = #tpu.dot_dimension_numbers<[1], [0], [0], [1], [0, 0, 1, 1], [], []>} : vector<8x32xf32>, vector<32x96xf32>, vector<8x96xf32> -> vector<8x96xf32>
    %8 = vector.extract_strided_slice %7 {offsets = [0, 0], sizes = [8, 32], strides = [1, 1]} : vector<8x96xf32> to vector<8x32xf32>
    %9 = vector.extract_strided_slice %7 {offsets = [0, 32], sizes = [8, 32], strides = [1, 1]} : vector<8x96xf32> to vector<8x32xf32>
    %10 = vector.extract_strided_slice %7 {offsets = [0, 64], sizes = [8, 32], strides = [1, 1]} : vector<8x96xf32> to vector<8x32xf32>
    %c0_10 = arith.constant 0 : index
    %c0_11 = arith.constant 0 : index
    %11 = vector.load %arg5[%c0_10, %c0_11] : memref<32x32xf32, #tpu.memory_space<vmem>>, vector<32x32xf32>
    %c0_12 = arith.constant 0 : index
    %c0_13 = arith.constant 0 : index
    %12 = vector.load %arg6[%c0_12, %c0_13] : memref<1x32xf32, #tpu.memory_space<vmem>>, vector<1x32xf32>
    %c0_14 = arith.constant 0 : index
    %c0_15 = arith.constant 0 : index
    %13 = vector.load %arg7[%c0_14, %c0_15] : memref<1x32xf32, #tpu.memory_space<vmem>>, vector<1x32xf32>
    %c0_16 = arith.constant 0 : index
    %c0_17 = arith.constant 0 : index
    %14 = vector.load %arg8[%c0_16, %c0_17] : memref<1x32xf32, #tpu.memory_space<vmem>>, vector<1x32xf32>
    %15 = vector.shape_cast %8 : vector<8x32xf32> to vector<8x4x8xf32>
    %16 = tpu.transpose %15, [1, 0, 2] : vector<8x4x8xf32> -> vector<4x8x8xf32>
    %17 = vector.shape_cast %9 : vector<8x32xf32> to vector<8x4x8xf32>
    %18 = tpu.transpose %17, [1, 0, 2] : vector<8x4x8xf32> -> vector<4x8x8xf32>
    %19 = vector.shape_cast %10 : vector<8x32xf32> to vector<8x4x8xf32>
    %20 = tpu.transpose %19, [1, 0, 2] : vector<8x4x8xf32> -> vector<4x8x8xf32>
    %cst_18 = arith.constant 3.200000e+01 : f32
    %cst_19 = arith.constant 5.000000e-01 : f32
    %21 = math.powf %cst_18, %cst_19 : f32
    %cst_20 = arith.constant dense<0.000000e+00> : vector<4x8x8xf32>
    %22 = tpu.matmul %16, %18, %cst_20 {dimension_numbers = #tpu.dot_dimension_numbers<[2], [2], [1], [1], [0, 0, 0, 1, 1, 1], [0], [0]>} : vector<4x8x8xf32>, vector<4x8x8xf32>, vector<4x8x8xf32> -> vector<4x8x8xf32>
    %23 = vector.broadcast %21 : f32 to vector<4x8x8xf32>
    %24 = arith.mulf %22, %23 : vector<4x8x8xf32>
    %25 = vector.shape_cast %5 : vector<8x8xf32> to vector<1x8x8xf32>
    %26 = vector.broadcast %25 : vector<1x8x8xf32> to vector<4x8x8xf32>
    %27 = arith.addf %24, %26 : vector<4x8x8xf32>
    %cst_21 = arith.constant dense<0xFF800000> : vector<4x8xf32>
    %28 = vector.multi_reduction <maximumf>, %27, %cst_21 [2] : vector<4x8x8xf32> to vector<4x8xf32>
    %29 = vector.shape_cast %28 : vector<4x8xf32> to vector<4x8x1xf32>
    %30 = vector.broadcast %29 : vector<4x8x1xf32> to vector<4x8x8xf32>
    %31 = arith.subf %27, %30 : vector<4x8x8xf32>
    %32 = math.exp %31 : vector<4x8x8xf32>
    %cst_22 = arith.constant dense<0.000000e+00> : vector<4x8xf32>
    %33 = vector.multi_reduction <add>, %32, %cst_22 [2] : vector<4x8x8xf32> to vector<4x8xf32>
    %34 = vector.shape_cast %33 : vector<4x8xf32> to vector<4x8x1xf32>
    %35 = tpu.reciprocal %34 {approx = true} : vector<4x8x1xf32> -> vector<4x8x1xf32>
    %36 = vector.broadcast %35 : vector<4x8x1xf32> to vector<4x8x8xf32>
    %37 = arith.mulf %32, %36 : vector<4x8x8xf32>
    %cst_23 = arith.constant dense<0.000000e+00> : vector<4x8x8xf32>
    %38 = tpu.matmul %37, %20, %cst_23 {dimension_numbers = #tpu.dot_dimension_numbers<[2], [1], [1], [2], [0, 0, 0, 1, 1, 2], [0], [0]>} : vector<4x8x8xf32>, vector<4x8x8xf32>, vector<4x8x8xf32> -> vector<4x8x8xf32>
    %39 = tpu.transpose %38, [1, 0, 2] : vector<4x8x8xf32> -> vector<8x4x8xf32>
    %40 = vector.shape_cast %39 : vector<8x4x8xf32> to vector<8x32xf32>
    %cst_24 = arith.constant dense<0.000000e+00> : vector<8x32xf32>
    %41 = tpu.matmul %40, %11, %cst_24 {dimension_numbers = #tpu.dot_dimension_numbers<[1], [0], [0], [1], [0, 0, 1, 1], [], []>} : vector<8x32xf32>, vector<32x32xf32>, vector<8x32xf32> -> vector<8x32xf32>
    %42 = vector.broadcast %12 : vector<1x32xf32> to vector<8x32xf32>
    %43 = arith.addf %41, %42 : vector<8x32xf32>
    %44 = arith.addf %43, %8 : vector<8x32xf32>
    %cst_25 = arith.constant dense<0.000000e+00> : vector<8xf32>
    %45 = vector.multi_reduction <add>, %44, %cst_25 [1] : vector<8x32xf32> to vector<8xf32>
    %46 = vector.shape_cast %45 : vector<8xf32> to vector<8x1xf32>
    %cst_26 = arith.constant 3.200000e+01 : f32
    %47 = vector.broadcast %cst_26 : f32 to vector<8x1xf32>
    %48 = arith.divf %46, %47 : vector<8x1xf32>
    %49 = vector.broadcast %48 : vector<8x1xf32> to vector<8x32xf32>
    %50 = arith.subf %44, %49 : vector<8x32xf32>
    %51 = arith.mulf %50, %50 : vector<8x32xf32>
    %cst_27 = arith.constant dense<0.000000e+00> : vector<8xf32>
    %52 = vector.multi_reduction <add>, %51, %cst_27 [1] : vector<8x32xf32> to vector<8xf32>
    %53 = vector.shape_cast %52 : vector<8xf32> to vector<8x1xf32>
    %cst_28 = arith.constant 3.200000e+01 : f32
    %54 = vector.broadcast %cst_28 : f32 to vector<8x1xf32>
    %55 = arith.divf %53, %54 : vector<8x1xf32>
    %56 = vector.broadcast %48 : vector<8x1xf32> to vector<8x32xf32>
    %57 = arith.subf %44, %56 : vector<8x32xf32>
    %cst_29 = arith.constant 9.99999997E-7 : f32
    %58 = vector.broadcast %cst_29 : f32 to vector<8x1xf32>
    %59 = arith.addf %55, %58 : vector<8x1xf32>
    %60 = math.rsqrt %59 : vector<8x1xf32>
    %61 = vector.broadcast %60 : vector<8x1xf32> to vector<8x32xf32>
    %62 = arith.mulf %57, %61 : vector<8x32xf32>
    %63 = vector.broadcast %13 : vector<1x32xf32> to vector<8x32xf32>
    %64 = arith.mulf %62, %63 : vector<8x32xf32>
    %65 = vector.broadcast %14 : vector<1x32xf32> to vector<8x32xf32>
    %66 = arith.addf %64, %65 : vector<8x32xf32>
    %c0_30 = arith.constant 0 : index
    %c0_31 = arith.constant 0 : index
    %c0_32 = arith.constant 0 : index
    %c0_33 = arith.constant 0 : index
    %67 = vector.load %arg18[%c0_30, %c0_31, %c0_32, %c0_33] : memref<1x4x8x8xf32, #tpu.memory_space<vmem>>, vector<1x4x8x8xf32>
    %68 = vector.shape_cast %67 : vector<1x4x8x8xf32> to vector<4x8x8xf32>
    %69 = vector.shape_cast %37 : vector<4x8x8xf32> to vector<1x4x8x8xf32>
    tpu.vector_store %arg18[%c0_30, %c0_31, %c0_32, %c0_33], %69 {strides = array<i32>} : memref<1x4x8x8xf32, #tpu.memory_space<vmem>>, vector<1x4x8x8xf32>,
    %c0_34 = arith.constant 0 : index
    %c0_35 = arith.constant 0 : index
    %70 = vector.load %arg9[%c0_34, %c0_35] : memref<32x32xf32, #tpu.memory_space<vmem>>, vector<32x32xf32>
    %cst_36 = arith.constant dense<0.000000e+00> : vector<8x32xf32>
    %71 = tpu.matmul %66, %70, %cst_36 {dimension_numbers = #tpu.dot_dimension_numbers<[1], [0], [0], [1], [0, 0, 1, 1], [], []>} : vector<8x32xf32>, vector<32x32xf32>, vector<8x32xf32> -> vector<8x32xf32>
    %c0_37 = arith.constant 0 : index
    %c0_38 = arith.constant 0 : index
    %72 = vector.load %arg10[%c0_37, %c0_38] : memref<32x64xf32, #tpu.memory_space<vmem>>, vector<32x64xf32>
    %cst_39 = arith.constant dense<0.000000e+00> : vector<8x64xf32>
    %73 = tpu.matmul %3, %72, %cst_39 {dimension_numbers = #tpu.dot_dimension_numbers<[1], [0], [0], [1], [0, 0, 1, 1], [], []>} : vector<8x32xf32>, vector<32x64xf32>, vector<8x64xf32> -> vector<8x64xf32>
    %74 = vector.extract_strided_slice %73 {offsets = [0, 0], sizes = [8, 32], strides = [1, 1]} : vector<8x64xf32> to vector<8x32xf32>
    %75 = vector.extract_strided_slice %73 {offsets = [0, 32], sizes = [8, 32], strides = [1, 1]} : vector<8x64xf32> to vector<8x32xf32>
    %c0_40 = arith.constant 0 : index
    %c0_41 = arith.constant 0 : index
    %76 = vector.load %arg11[%c0_40, %c0_41] : memref<32x32xf32, #tpu.memory_space<vmem>>, vector<32x32xf32>
    %c0_42 = arith.constant 0 : index
    %c0_43 = arith.constant 0 : index
    %77 = vector.load %arg12[%c0_42, %c0_43] : memref<1x32xf32, #tpu.memory_space<vmem>>, vector<1x32xf32>
    %c0_44 = arith.constant 0 : index
    %c0_45 = arith.constant 0 : index
    %78 = vector.load %arg13[%c0_44, %c0_45] : memref<1x32xf32, #tpu.memory_space<vmem>>, vector<1x32xf32>
    %c0_46 = arith.constant 0 : index
    %c0_47 = arith.constant 0 : index
    %79 = vector.load %arg14[%c0_46, %c0_47] : memref<1x32xf32, #tpu.memory_space<vmem>>, vector<1x32xf32>
    %80 = vector.shape_cast %71 : vector<8x32xf32> to vector<8x4x8xf32>
    %81 = tpu.transpose %80, [1, 0, 2] : vector<8x4x8xf32> -> vector<4x8x8xf32>
    %82 = vector.shape_cast %74 : vector<8x32xf32> to vector<8x4x8xf32>
    %83 = tpu.transpose %82, [1, 0, 2] : vector<8x4x8xf32> -> vector<4x8x8xf32>
    %84 = vector.shape_cast %75 : vector<8x32xf32> to vector<8x4x8xf32>
    %85 = tpu.transpose %84, [1, 0, 2] : vector<8x4x8xf32> -> vector<4x8x8xf32>
    %cst_48 = arith.constant 3.200000e+01 : f32
    %cst_49 = arith.constant 5.000000e-01 : f32
    %86 = math.powf %cst_48, %cst_49 : f32
    %cst_50 = arith.constant dense<0.000000e+00> : vector<4x8x8xf32>
    %87 = tpu.matmul %81, %83, %cst_50 {dimension_numbers = #tpu.dot_dimension_numbers<[2], [2], [1], [1], [0, 0, 0, 1, 1, 1], [0], [0]>} : vector<4x8x8xf32>, vector<4x8x8xf32>, vector<4x8x8xf32> -> vector<4x8x8xf32>
    %88 = vector.broadcast %86 : f32 to vector<4x8x8xf32>
    %89 = arith.mulf %87, %88 : vector<4x8x8xf32>
    %90 = vector.shape_cast %5 : vector<8x8xf32> to vector<1x8x8xf32>
    %91 = vector.broadcast %90 : vector<1x8x8xf32> to vector<4x8x8xf32>
    %92 = arith.addf %89, %91 : vector<4x8x8xf32>
    %cst_51 = arith.constant dense<0xFF800000> : vector<4x8xf32>
    %93 = vector.multi_reduction <maximumf>, %92, %cst_51 [2] : vector<4x8x8xf32> to vector<4x8xf32>
    %94 = vector.shape_cast %93 : vector<4x8xf32> to vector<4x8x1xf32>
    %95 = vector.broadcast %94 : vector<4x8x1xf32> to vector<4x8x8xf32>
    %96 = arith.subf %92, %95 : vector<4x8x8xf32>
    %97 = math.exp %96 : vector<4x8x8xf32>
    %cst_52 = arith.constant dense<0.000000e+00> : vector<4x8xf32>
    %98 = vector.multi_reduction <add>, %97, %cst_52 [2] : vector<4x8x8xf32> to vector<4x8xf32>
    %99 = vector.shape_cast %98 : vector<4x8xf32> to vector<4x8x1xf32>
    %100 = tpu.reciprocal %99 {approx = true} : vector<4x8x1xf32> -> vector<4x8x1xf32>
    %101 = vector.broadcast %100 : vector<4x8x1xf32> to vector<4x8x8xf32>
    %102 = arith.mulf %97, %101 : vector<4x8x8xf32>
    %cst_53 = arith.constant dense<0.000000e+00> : vector<4x8x8xf32>
    %103 = tpu.matmul %102, %85, %cst_53 {dimension_numbers = #tpu.dot_dimension_numbers<[2], [1], [1], [2], [0, 0, 0, 1, 1, 2], [0], [0]>} : vector<4x8x8xf32>, vector<4x8x8xf32>, vector<4x8x8xf32> -> vector<4x8x8xf32>
    %104 = tpu.transpose %103, [1, 0, 2] : vector<4x8x8xf32> -> vector<8x4x8xf32>
    %105 = vector.shape_cast %104 : vector<8x4x8xf32> to vector<8x32xf32>
    %cst_54 = arith.constant dense<0.000000e+00> : vector<8x32xf32>
    %106 = tpu.matmul %105, %76, %cst_54 {dimension_numbers = #tpu.dot_dimension_numbers<[1], [0], [0], [1], [0, 0, 1, 1], [], []>} : vector<8x32xf32>, vector<32x32xf32>, vector<8x32xf32> -> vector<8x32xf32>
    %107 = vector.broadcast %77 : vector<1x32xf32> to vector<8x32xf32>
    %108 = arith.addf %106, %107 : vector<8x32xf32>
    %109 = arith.addf %108, %71 : vector<8x32xf32>
    %cst_55 = arith.constant dense<0.000000e+00> : vector<8xf32>
    %110 = vector.multi_reduction <add>, %109, %cst_55 [1] : vector<8x32xf32> to vector<8xf32>
    %111 = vector.shape_cast %110 : vector<8xf32> to vector<8x1xf32>
    %cst_56 = arith.constant 3.200000e+01 : f32
    %112 = vector.broadcast %cst_56 : f32 to vector<8x1xf32>
    %113 = arith.divf %111, %112 : vector<8x1xf32>
    %114 = vector.broadcast %113 : vector<8x1xf32> to vector<8x32xf32>
    %115 = arith.subf %109, %114 : vector<8x32xf32>
    %116 = arith.mulf %115, %115 : vector<8x32xf32>
    %cst_57 = arith.constant dense<0.000000e+00> : vector<8xf32>
    %117 = vector.multi_reduction <add>, %116, %cst_57 [1] : vector<8x32xf32> to vector<8xf32>
    %118 = vector.shape_cast %117 : vector<8xf32> to vector<8x1xf32>
    %cst_58 = arith.constant 3.200000e+01 : f32
    %119 = vector.broadcast %cst_58 : f32 to vector<8x1xf32>
    %120 = arith.divf %118, %119 : vector<8x1xf32>
    %121 = vector.broadcast %113 : vector<8x1xf32> to vector<8x32xf32>
    %122 = arith.subf %109, %121 : vector<8x32xf32>
    %cst_59 = arith.constant 9.99999997E-7 : f32
    %123 = vector.broadcast %cst_59 : f32 to vector<8x1xf32>
    %124 = arith.addf %120, %123 : vector<8x1xf32>
    %125 = math.rsqrt %124 : vector<8x1xf32>
    %126 = vector.broadcast %125 : vector<8x1xf32> to vector<8x32xf32>
    %127 = arith.mulf %122, %126 : vector<8x32xf32>
    %128 = vector.broadcast %78 : vector<1x32xf32> to vector<8x32xf32>
    %129 = arith.mulf %127, %128 : vector<8x32xf32>
    %130 = vector.broadcast %79 : vector<1x32xf32> to vector<8x32xf32>
    %131 = arith.addf %129, %130 : vector<8x32xf32>
    %c0_60 = arith.constant 0 : index
    %c0_61 = arith.constant 0 : index
    %c0_62 = arith.constant 0 : index
    %c0_63 = arith.constant 0 : index
    %132 = vector.load %arg19[%c0_60, %c0_61, %c0_62, %c0_63] : memref<1x4x8x8xf32, #tpu.memory_space<vmem>>, vector<1x4x8x8xf32>
    %133 = vector.shape_cast %132 : vector<1x4x8x8xf32> to vector<4x8x8xf32>
    %134 = vector.shape_cast %102 : vector<4x8x8xf32> to vector<1x4x8x8xf32>
    tpu.vector_store %arg19[%c0_60, %c0_61, %c0_62, %c0_63], %134 {strides = array<i32>} : memref<1x4x8x8xf32, #tpu.memory_space<vmem>>, vector<1x4x8x8xf32>,
    %c0_64 = arith.constant 0 : index
    %c0_65 = arith.constant 0 : index
    %135 = vector.load %arg15[%c0_64, %c0_65] : memref<32x32xf32, #tpu.memory_space<vmem>>, vector<32x32xf32>
    %cst_66 = arith.constant dense<0.000000e+00> : vector<8x32xf32>
    %136 = tpu.matmul %131, %135, %cst_66 {dimension_numbers = #tpu.dot_dimension_numbers<[1], [0], [0], [1], [0, 0, 1, 1], [], []>} : vector<8x32xf32>, vector<32x32xf32>, vector<8x32xf32> -> vector<8x32xf32>
    %c0_67 = arith.constant 0 : index
    %c0_68 = arith.constant 0 : index
    %137 = vector.load %arg16[%c0_67, %c0_68] : memref<1x32xf32, #tpu.memory_space<vmem>>, vector<1x32xf32>
    %138 = vector.broadcast %137 : vector<1x32xf32> to vector<8x32xf32>
    %139 = arith.addf %136, %138 : vector<8x32xf32>
    %c0_69 = arith.constant 0 : index
    %c0_70 = arith.constant 0 : index
    %c0_71 = arith.constant 0 : index
    %140 = vector.load %arg17[%c0_69, %c0_70, %c0_71] : memref<1x8x32xf32, #tpu.memory_space<vmem>>, vector<1x8x32xf32>
    %141 = vector.shape_cast %140 : vector<1x8x32xf32> to vector<8x32xf32>
    %142 = vector.shape_cast %139 : vector<8x32xf32> to vector<1x8x32xf32>
    tpu.vector_store %arg17[%c0_69, %c0_70, %c0_71], %142 {strides = array<i32>} : memref<1x8x32xf32, #tpu.memory_space<vmem>>, vector<1x8x32xf32>,
    return
  }
  func.func @transform_0(%arg0: i32) -> (i32, i32, i32) {
    %c0_i32 = arith.constant 0 : i32
    %c0_i32_0 = arith.constant 0 : i32
    %c0_i32_1 = arith.constant 0 : i32
    return %arg0, %c0_i32, %c0_i32_0 : i32, i32, i32
  }
  func.func @transform_1(%arg0: i32) -> (i32, i32, i32) {
    %c0_i32 = arith.constant 0 : i32
    %c0_i32_0 = arith.constant 0 : i32
    %c0_i32_1 = arith.constant 0 : i32
    return %arg0, %c0_i32, %c0_i32_0 : i32, i32, i32
  }
  func.func @transform_2(%arg0: i32) -> (i32, i32, i32) {
    %c0_i32 = arith.constant 0 : i32
    %c0_i32_0 = arith.constant 0 : i32
    %c0_i32_1 = arith.constant 0 : i32
    return %arg0, %c0_i32, %c0_i32_0 : i32, i32, i32
  }
  func.func @transform_3(%arg0: i32) -> (i32, i32) {
    %c0_i32 = arith.constant 0 : i32
    %c0_i32_0 = arith.constant 0 : i32
    %c0_i32_1 = arith.constant 0 : i32
    return %c0_i32, %c0_i32_0 : i32, i32
  }
  func.func @transform_4(%arg0: i32) -> (i32, i32) {
    %c0_i32 = arith.constant 0 : i32
    %c0_i32_0 = arith.constant 0 : i32
    %c0_i32_1 = arith.constant 0 : i32
    return %c0_i32, %c0_i32_0 : i32, i32
  }
  func.func @transform_5(%arg0: i32) -> (i32, i32) {
    %c0_i32 = arith.constant 0 : i32
    %c0_i32_0 = arith.constant 0 : i32
    %c0_i32_1 = arith.constant 0 : i32
    return %c0_i32, %c0_i32_0 : i32, i32
  }
  func.func @transform_6(%arg0: i32) -> (i32, i32) {
    %c0_i32 = arith.constant 0 : i32
    %c0_i32_0 = arith.constant 0 : i32
    %c0_i32_1 = arith.constant 0 : i32
    return %c0_i32, %c0_i32_0 : i32, i32
  }
  func.func @transform_7(%arg0: i32) -> (i32, i32) {
    %c0_i32 = arith.constant 0 : i32
    %c0_i32_0 = arith.constant 0 : i32
    %c0_i32_1 = arith.constant 0 : i32
    return %c0_i32, %c0_i32_0 : i32, i32
  }
  func.func @transform_8(%arg0: i32) -> (i32, i32) {
    %c0_i32 = arith.constant 0 : i32
    %c0_i32_0 = arith.constant 0 : i32
    %c0_i32_1 = arith.constant 0 : i32
    return %c0_i32, %c0_i32_0 : i32, i32
  }
  func.func @transform_9(%arg0: i32) -> (i32, i32) {
    %c0_i32 = arith.constant 0 : i32
    %c0_i32_0 = arith.constant 0 : i32
    %c0_i32_1 = arith.constant 0 : i32
    return %c0_i32, %c0_i32_0 : i32, i32
  }
  func.func @transform_10(%arg0: i32) -> (i32, i32) {
    %c0_i32 = arith.constant 0 : i32
    %c0_i32_0 = arith.constant 0 : i32
    %c0_i32_1 = arith.constant 0 : i32
    return %c0_i32, %c0_i32_0 : i32, i32
  }
  func.func @transform_11(%arg0: i32) -> (i32, i32) {
    %c0_i32 = arith.constant 0 : i32
    %c0_i32_0 = arith.constant 0 : i32
    %c0_i32_1 = arith.constant 0 : i32
    return %c0_i32, %c0_i32_0 : i32, i32
  }
  func.func @transform_12(%arg0: i32) -> (i32, i32) {
    %c0_i32 = arith.constant 0 : i32
    %c0_i32_0 = arith.constant 0 : i32
    %c0_i32_1 = arith.constant 0 : i32
    return %c0_i32, %c0_i32_0 : i32, i32
  }
  func.func @transform_13(%arg0: i32) -> (i32, i32) {
    %c0_i32 = arith.constant 0 : i32
    %c0_i32_0 = arith.constant 0 : i32
    %c0_i32_1 = arith.constant 0 : i32
    return %c0_i32, %c0_i32_0 : i32, i32
  }
  func.func @transform_14(%arg0: i32) -> (i32, i32) {
    %c0_i32 = arith.constant 0 : i32
    %c0_i32_0 = arith.constant 0 : i32
    %c0_i32_1 = arith.constant 0 : i32
    return %c0_i32, %c0_i32_0 : i32, i32
  }
  func.func @transform_15(%arg0: i32) -> (i32, i32) {
    %c0_i32 = arith.constant 0 : i32
    %c0_i32_0 = arith.constant 0 : i32
    %c0_i32_1 = arith.constant 0 : i32
    return %c0_i32, %c0_i32_0 : i32, i32
  }
  func.func @transform_16(%arg0: i32) -> (i32, i32, i32) {
    %c0_i32 = arith.constant 0 : i32
    %c0_i32_0 = arith.constant 0 : i32
    %c0_i32_1 = arith.constant 0 : i32
    return %arg0, %c0_i32, %c0_i32_0 : i32, i32, i32
  }
  func.func @transform_17(%arg0: i32) -> (i32, i32, i32, i32) {
    %c0_i32 = arith.constant 0 : i32
    %c0_i32_0 = arith.constant 0 : i32
    %c0_i32_1 = arith.constant 0 : i32
    %c0_i32_2 = arith.constant 0 : i32
    return %arg0, %c0_i32, %c0_i32_0, %c0_i32_1 : i32, i32, i32, i32
  }
  func.func @transform_18(%arg0: i32) -> (i32, i32, i32, i32) {
    %c0_i32 = arith.constant 0 : i32
    %c0_i32_0 = arith.constant 0 : i32
    %c0_i32_1 = arith.constant 0 : i32
    %c0_i32_2 = arith.constant 0 : i32
    return %arg0, %c0_i32, %c0_i32_0, %c0_i32_1 : i32, i32, i32, i32
  }
}

</mosaic_0001>

<bundles_post_ra>
// kernel: tpu_custom_call.1
= control target key start
LH: loop header
LB: loop body
LE: loop exit
PB: predicated region body
PF: predicated region fallthrough
CT: control target
= control target key end

     0   :  { %s4475_s0 = inlined_call_operand.hbm [shape: f32[2,8,32], index: 0, kind: input, shape index: {}]   ;;  %s4476_s1 = inlined_call_operand.hbm [shape: f32[2,8,32], index: 1, kind: input, shape index: {}]   ;;  %s4477_s2 = inlined_call_operand.hbm [shape: f32[2,8,8], index: 2, kind: input, shape index: {}]   ;;  %s4478_s3 = inlined_call_operand.hbm [shape: f32[32,96], index: 3, kind: input, shape index: {}]   ;;  %s4479_s4 = inlined_call_operand.hbm [shape: f32[32,32], index: 4, kind: input, shape index: {}]   ;;  %s4480_s5 = inlined_call_operand.vmem [shape: f32[1,32], index: 5, kind: input, shape index: {}]   ;;  %s4481_s6 = inlined_call_operand.vmem [shape: f32[1,32], index: 6, kind: input, shape index: {}]   ;;  %s4482_s7 = inlined_call_operand.vmem [shape: f32[1,32], index: 7, kind: input, shape index: {}]   ;;  %s4483_s8 = inlined_call_operand.hbm [shape: f32[32,32], index: 8, kind: input, shape index: {}]   ;;  %s4484_s9 = inlined_call_operand.hbm [shape: f32[32,64], index: 9, kind: input, shape index: {}]   ;;  %s4485_s10 = inlined_call_operand.hbm [shape: f32[32,32], index: 10, kind: input, shape index: {}]   ;;  %s4486_s11 = inlined_call_operand.vmem [shape: f32[1,32], index: 11, kind: input, shape index: {}]   ;;  %s4487_s12 = inlined_call_operand.vmem [shape: f32[1,32], index: 12, kind: input, shape index: {}]   ;;  %s4488_s13 = inlined_call_operand.vmem [shape: f32[1,32], index: 13, kind: input, shape index: {}]   ;;  %s4489_s14 = inlined_call_operand.hbm [shape: f32[32,32], index: 14, kind: input, shape index: {}]   ;;  %s4490_s15 = inlined_call_operand.vmem [shape: f32[1,32], index: 15, kind: input, shape index: {}]   ;;  %s4491_s16 = inlined_call_operand.hbm [shape: f32[2,8,32], index: 16, kind: output, shape index: {0}]   ;;  %s4492_s17 = inlined_call_operand.hbm [shape: f32[2,4,8,8], index: 17, kind: output, shape index: {1}]   ;;  %s4493_s18 = inlined_call_operand.hbm [shape: f32[2,4,8,8], index: 18, kind: output, shape index: {2}]  }
   0x1   :  { %4519 = sst [smem:[#allocation34_spill]] %s4475_s0 }
   0x2   :  { %4520 = sst [smem:[#allocation35_spill]] %s4476_s1 }
   0x3   :  { %4521 = sst [smem:[#allocation36_spill]] %s4477_s2 }
   0x4   :  { %4522 = sst [smem:[#allocation37_spill]] %s4478_s3 }
   0x5   :  { %4523 = sst [smem:[#allocation38_spill]] %s4479_s4 }
   0x6   :  { %4524 = sst [smem:[#allocation39_spill]] %s4483_s8 }
   0x7   :  { %4525 = sst [smem:[#allocation40_spill]] %s4485_s10 }
   0x8   :  { %4526 = sst [smem:[#allocation41_spill]] %s4487_s12 }
   0x9   :  { %4527 = sst [smem:[#allocation42_spill]] %s4488_s13 }
   0xa   :  { %4528 = sst [smem:[#allocation43_spill]] %s4490_s15 }
   0xb   :  { %4529 = sst [smem:[#allocation44_spill]] %s4491_s16 }
   0xc   :  { %4530 = sst [smem:[#allocation45_spill]] %s4492_s17 }
   0xd   :  { %4531 = sst [smem:[#allocation46_spill]] %s4493_s18 }
   0xe   :  { %24 = vsyncpa [#allocation3], 0 }
   0xf   :  { %26 = vsyncpa [#allocation3 + $0x1], 0 }
  0x10   :  { %27 = vsyncpa [#allocation6], 0 }
  0x11   :  { %29 = vsyncpa [#allocation6 + $0x1], 0 }
  0x12   :  { %30 = vsyncpa [#allocation9], 0 }
  0x13   :  { %31 = vsyncpa [#allocation12], 0 }
  0x14   :  { %32 = vsyncpa [#allocation15], 0 }
  0x15   :  { %33 = vsyncpa [#allocation4], 0 }
  0x16   :  { %35 = vsyncpa [#allocation4 + $0x1], 0 }
  0x17   :  { %36 = vsyncpa [#allocation19], 0 }
  0x18   :  { %38 = vsyncpa [#allocation19 + $0x1], 0  ;;  %s3619_s27 = smov 0   ;;  %s3621_s28 = smov 0  }
  0x19   :  { %s3623_s29 = smov 0   ;;  %s3625_s30 = smov 0  }
  0x1a LB: > { %4532 = sst [smem:[#allocation28_spill]] %s3490_s27  ;;  %s3643_s20 = sadd.s32 4294967295, %s3502_s30   ;;  %s3502_s30 = sphi %s3625_s30, %s4573_s30   ;;  %s3498_s29 = sphi %s3623_s29, %s4577_s29   ;;  %s3494_s28 = sphi %s3621_s28, %s4576_s28   ;;  %s3490_s27 = sphi %s3619_s27, %s4575_s27  }
  0x1b   : > { %4533 = sst [smem:[#allocation29_spill]] %s3502_s30  ;;  %p2815_p0 = scmp.ge.s32.totalorder %s3502_s30, 1 }
  0x1c   : > { %s4534_s3 = sld [smem:[#allocation37_spill]]  ;;  %p4514_p1 = scmp.eq.s32.totalorder %s3643_s20, 0 }
  0x1d   : > { %p478_p2 = scmp.lt.s32.totalorder %s3502_s30, 3  ;;  %s3504_s22 = smov [#allocation8]  }
  0x1e   : > { %s491_s2 = sshll.u32 %s3504_s22, 4  ;;  %s4536_s8 = sld [smem:[#allocation39_spill]]  ;;  %s492_s2 = int_to_ptr.vmem [resolvable:$true] %s491_s2 }
  0x1f   : > { %p3648_p3 = pnand %p2815_p0, %p478_p2  ;;  %s4538_s10 = sld [smem:[#allocation40_spill]] }
  0x20   : > { %s4497_s24 = smov 128   ;;  %s51_s19 = sadd.s32 1, %s3498_s29 }
  0x21   : > { %p2920_p4 = pneg %p3648_p3  ;;  %p58_p7 = scmp.ne.s32.totalorder %s3498_s29, %s3494_s28 }
  0x22   : > { %s489_s1 = sshll.u32 %s4534_s3, 4  ;;  %s3505_s3 = smov [#allocation11]   ;;  %s490_s1 = int_to_ptr.hbm [resolvable:$true] %s489_s1 }
  0x23   : > { %p3660_p6 = pnand %p2920_p4, %p4514_p1  ;;  %s528_s23 = sshll.u32 %s3505_s3, 4  ;;  %s529_s23 = int_to_ptr.vmem [resolvable:$true] %s528_s23 }
  0x24   : > { %s526_s25 = sshll.u32 %s4536_s8, 4  ;;  %s4499_s8 = smov 8   ;;  %s527_s25 = int_to_ptr.hbm [resolvable:$true] %s526_s25 }
  0x25   : > { %s554_s22 = sshll.u32 %s4538_s10, 4  ;;  %s3508_s3 = smov [#allocation14]   ;;  %s555_s22 = int_to_ptr.hbm [resolvable:$true] %s554_s22 }
  0x26   : > { %2923 = dma.hbm_to_vmem [thread:$0]  (!%p3660_p6), %s490_s1, 512, %s492_s2, [#allocation9], %s4497_s24, %s4497_s24, %s4499_s8  }
  0x27   : > { %2929 = dma.hbm_to_vmem [thread:$0]  (!%p3660_p6), %s527_s25, 512, %s529_s23, [#allocation12], %s4497_s24, %s4497_s24, %s4499_s8  }
  0x28   : > { %s556_s0 = sshll.u32 %s3508_s3, 4  ;;  %s4501_s1 = sadd.s32 4294967294, %s3502_s30   ;;  %s557_s0 = int_to_ptr.vmem [resolvable:$true] %s556_s0 }
  0x29   : > { %2935 = dma.hbm_to_vmem [thread:$0]  (!%p3660_p6), %s555_s22, 512, %s557_s0, [#allocation15], %s4497_s24, %s4497_s24, %s4499_s8  }
  0x2a   : > { %s3684_s2 = sadd.s32 1, %s3502_s30   ;;  %p59_p9 = scmp.eq.s32.totalorder %s3502_s30, 0 }
  0x2b   : > { %4539 = sst [smem:[#allocation30_spill]] %s3684_s2  ;;  %s48_s25 = ssub.s32 %s3502_s30, %s3684_s2 }
  0x2c   : > { %p49_p8 = scmp.eq.s32.totalorder %s48_s25, 0  ;;  %p64_p10 = scmp.ne.s32.totalorder %s3494_s28, %s3490_s27 }
  0x2d   : > { %p413_p11 = scmp.eq.s32.totalorder %s3643_s20, 1  ;;  %p60_p12 = por %p59_p9, %p58_p7 }
  0x2e   : > { %s3696_s23 = scalar_select %p49_p8, %s3498_s29, %s51_s19  }
  0x2f   : > { %p3700_p13 = por %p4514_p1, %p64_p10  ;;  %p3704_p0 = por %p413_p11, %p58_p7 }
  0x30   : > { %4540 = sst [smem:[#allocation31_spill]] %s3696_s23  ;;  %p419_p2 = scmp.eq.s32.totalorder %s4501_s1, 1 }
  0x31   : > { %s4542_s3 = scalar_select %p3704_p0, 1, 0 }
  0x32   : > { %p2965_p4 = scmp.lt.s32.totalorder %s3502_s30, 2  ;;  %s4507_s0 = sand.u32 1, %s3498_s29  }
  0x33   : > { %4543 = sst [smem:[#allocation32_spill]] %s4542_s3  ;;  %p3712_p5 = por %p419_p2, %p64_p10 }
  0x34   : > { %s3718_s19 = sshll.u32 %s4507_s0, 3  ;;  %s3721_s24 = sshll.u32 %s3502_s30, 3 }
  0x35   : > { %s4544_s25 = scalar_select %p3712_p5, 1, 0 }
  0x36   : > { %p3723_p8 = pnand %p2965_p4, %p60_p12  ;;  %s615_s1 = sand.u32 1, %s3502_s30  }
  0x37   : > { %4545 = sst [smem:[#allocation33_spill]] %s4544_s25  ;;  %s619_s15 = scalar_lea.vmem [#allocation5], %s3718_s19 }
  0x38   : > { %s4547_s2 = sld [smem:[#allocation35_spill]]  ;;  %s627_s25 = sshll.u32 %s619_s15, 4  ;;  %s628_s25 = int_to_ptr.vmem [resolvable:$true] %s627_s25 }
  0x39   : > { %s4548_s4 = sld [smem:[#allocation38_spill]]  ;;  %s3736_s3 = scalar_lea.sflag [#allocation6], %s615_s1 }
  0x3a   : > { %p3184_p9 = pneg %p3723_p8 }
  0x3e   : > { %s623_s27 = scalar_lea.hbm %s4547_s2, %s3721_s24 }
  0x3f   : > { %s625_s16 = sshll.u32 %s623_s27, 4  ;;  %s503_s17 = sshll.u32 %s4548_s4, 4  ;;  %s626_s16 = int_to_ptr.hbm [resolvable:$true] %s625_s16  ;;  %s504_s17 = int_to_ptr.hbm [resolvable:$true] %s503_s17 }
  0x40   : > { %s3180_s13 = sshra.s32 %s626_s16, 4  ;;  %s3187_s27 = scalar_lea.hbm %s4547_s2, 16  ;;  %s3181_s13 = int_to_ptr.hbm [resolvable:$true] %s3180_s13 }
  0x41   : > { %s3182_s12 = scalar_lea.hbm %s3181_s13, 8  ;;  %p3188_p12 = scmp.lt.s32.totalorder %s3181_s13, %s4547_s2 }
  0x42   : > { %p3183_p7 = scmp.ne.s32.totalorder %s3181_s13, %s3182_s12  ;;  %p3189_p2 = scmp.lt.s32.totalorder %s3187_s27, %s3182_s12 }
  0x44   : > { %p3185_p10 = pnand %p3184_p9, %p3183_p7  ;;  %p3190_p4 = por %p3189_p2, %p3188_p12 }
  0x46   : > { %p3186_p11 = pneg %p3185_p10 }
  0x48   : > { %p3191_p1 = pnand %p3190_p4, %p3186_p11 }
  0x4a   : > { %3194 = shalt.err (!%p3191_p1)
}
  0x4b   : > { %2945 = dma.hbm_to_vmem [thread:$0]  (!%p3723_p8), %s626_s16, 128, %s628_s25, %s3736_s3  }
  0x4c   : > { %s3509_s18 = smov [#allocation10]   ;;  %s540_s13 = sshll.u32 %s4484_s9, 4  ;;  %s541_s13 = int_to_ptr.hbm [resolvable:$true] %s540_s13 }
  0x4d   : > { %s505_s1 = sshll.u32 %s3509_s18, 4  ;;  %s4549_s12 = smov 8   ;;  %s506_s1 = int_to_ptr.vmem [resolvable:$true] %s505_s1 }
  0x4e   : > { %s4550_s30 = smov 128   ;;  %s577_s16 = sshll.u32 %s4489_s14, 4  ;;  %s578_s16 = int_to_ptr.hbm [resolvable:$true] %s577_s16 }
  0x4f   : > { %2926 = dma.hbm_to_vmem [thread:$0]  (!%p3660_p6), %s504_s17, 512, %s506_s1, [#allocation9], %s4550_s30, %s4550_s30, %s4549_s12  }
  0x50   : > { %s3510_s25 = smov [#allocation13]   ;;  %s3511_s18 = smov [#allocation16]  }
  0x51   : > { %s542_s23 = sshll.u32 %s3510_s25, 4  ;;  %s579_s0 = sshll.u32 %s3511_s18, 4  ;;  %s543_s23 = int_to_ptr.vmem [resolvable:$true] %s542_s23  ;;  %s580_s0 = int_to_ptr.vmem [resolvable:$true] %s579_s0 }
  0x52   : > { %2932 = dma.hbm_to_vmem [thread:$0]  (!%p3660_p6), %s541_s13, 512, %s543_s23, [#allocation12], %s4550_s30, %s4550_s30, %s4549_s12  }
  0x53   : > { %2938 = dma.hbm_to_vmem [thread:$0]  (!%p3660_p6), %s578_s16, 512, %s580_s0, [#allocation15], %s4550_s30, %s4550_s30, %s4549_s12  }
  0x54   : > { %s4551_s10 = sld [smem:[#allocation34_spill]]  ;;  %s600_s27 = scalar_lea.vmem [#allocation2], %s3718_s19 }
  0x55   : > { %s608_s25 = sshll.u32 %s600_s27, 4  ;;  %s4552_s4 = sand.u32 1, %s3498_s29   ;;  %s609_s25 = int_to_ptr.vmem [resolvable:$true] %s608_s25 }
  0x56   : > { %s597_s13 = scalar_lea.sflag [#allocation3], %s4552_s4 }
  0x5a   : > { %s604_s15 = scalar_lea.hbm %s4551_s10, %s3721_s24  ;;  %s3307_s30 = scalar_lea.hbm %s4551_s10, 16 }
  0x5b   : > { %s606_s2 = sshll.u32 %s604_s15, 4  ;;  %s607_s2 = int_to_ptr.hbm [resolvable:$true] %s606_s2 }
  0x5c   : > { %s3300_s23 = sshra.s32 %s607_s2, 4  ;;  %s3301_s23 = int_to_ptr.hbm [resolvable:$true] %s3300_s23 }
  0x5d   : > { %s3302_s18 = scalar_lea.hbm %s3301_s23, 8  ;;  %p3308_p6 = scmp.lt.s32.totalorder %s3301_s23, %s4551_s10 }
  0x5e   : > { %p3303_p1 = scmp.ne.s32.totalorder %s3301_s23, %s3302_s18  ;;  %p3309_p11 = scmp.lt.s32.totalorder %s3307_s30, %s3302_s18 }
  0x60   : > { %p3305_p7 = pnand %p3303_p1, %p3184_p9  ;;  %p3310_p12 = por %p3309_p11, %p3308_p6 }
  0x62   : > { %p3306_p10 = pneg %p3305_p7 }
  0x64   : > { %p3311_p2 = pnand %p3310_p12, %p3306_p10 }
  0x66   : > { %3314 = shalt.err (!%p3311_p2)
}
  0x67   : > { %2942 = dma.hbm_to_vmem [thread:$0]  (!%p3723_p8), %s607_s2, 128, %s609_s25, %s597_s13  }
  0x68   : > { %s4553_s1 = sld [smem:[#allocation36_spill]]  ;;  %s638_s27 = scalar_lea.vmem [#allocation7], %s3718_s19 }
  0x69   : > { %s646_s26 = sshll.u32 %s638_s27, 4  ;;  %s647_s26 = int_to_ptr.vmem [resolvable:$true] %s646_s26 }
  0x6e   : > { %s642_s15 = scalar_lea.hbm %s4553_s1, %s3721_s24  ;;  %s3337_s2 = scalar_lea.hbm %s4553_s1, 16 }
  0x6f   : > { %s644_s12 = sshll.u32 %s642_s15, 4  ;;  %s645_s12 = int_to_ptr.hbm [resolvable:$true] %s644_s12 }
  0x70   : > { %s3330_s23 = sshra.s32 %s645_s12, 4  ;;  %s3331_s23 = int_to_ptr.hbm [resolvable:$true] %s3330_s23 }
  0x71   : > { %s3332_s18 = scalar_lea.hbm %s3331_s23, 8  ;;  %p3338_p10 = scmp.lt.s32.totalorder %s3331_s23, %s4553_s1 }
  0x72   : > { %p3333_p4 = scmp.ne.s32.totalorder %s3331_s23, %s3332_s18  ;;  %p3339_p6 = scmp.lt.s32.totalorder %s3337_s2, %s3332_s18 }
  0x74   : > { %p3335_p1 = pnand %p3333_p4, %p3184_p9  ;;  %p3340_p11 = por %p3339_p6, %p3338_p10 }
  0x76   : > { %p3336_p7 = pneg %p3335_p1 }
  0x78   : > { %p3341_p12 = pnand %p3340_p11, %p3336_p7 }
  0x7a   : > { %3344 = shalt.err (!%p3341_p12)
}
  0x7b   : > { %2948 = dma.hbm_to_vmem [thread:$0]  (!%p3723_p8), %s645_s12, 128, %s647_s26, %s3736_s3  }
  0x7c   : > { %655 = sbr.rel (%p3648_p3) target bundleno = 3095 (0xc17), region = 84  ;;  %s3811_s24 = sand.u32 (!%p3648_p3), 1, %s3494_s28  }
  0x7d   : > { %s3814_s19 = sshll.u32 (!%p3648_p3), %s3811_s24, 3  ;;  %s658_s0 = scalar_lea.sflag (!%p3648_p3), [#allocation3], %s3811_s24 }
  0x7e   : > { %s661_s4 = scalar_lea.vmem (!%p3648_p3), [#allocation2], %s3814_s19 }
  0x81   : > { %3461 = dma.done.wait (%p3700_p13), %s658_s0, 128  }
  0x82   : > { %3463 = vsyncadd (%p3700_p13), %s658_s0, 4294967168  ;;  %s667_s8 = sand.u32 1, %s3643_s20   ;;  %s671_s3 = scalar_lea.vmem [#allocation5], %s3814_s19 }
  0x83   : > { %s668_s21 = scalar_lea.sflag [#allocation6], %s667_s8 }
  0x84   : > { %3465 = dma.done.wait (%p3700_p13), %s668_s21, 256  }
  0x85   : > { %3467 = vsyncadd (%p3700_p13), %s668_s21, 4294967040  ;;  %s681_s17 = scalar_lea.vmem [#allocation7], %s3814_s19  ;;  %p4554_p3 = scmp.eq.s32.totalorder %s3643_s20, 0 }
  0x87   : > { %3469 = dma.done.wait (%p4554_p3), [#allocation9], 1024   ;;  %p4555_p8 = pmov %p4554_p3 }
  0x88   : > { %p4556_p9 = pmov %p4554_p3 }
  0x89   : > { %3471 = vsyncadd (%p4555_p8), [#allocation9], 4294966272 }
  0x8a   : > { %3473 = dma.done.wait (%p4556_p9), [#allocation12], 1024   ;;  %p4557_p2 = pmov %p4554_p3 }
  0x8c   : > { %3475 = vsyncadd (%p4557_p2), [#allocation12], 4294966272  ;;  %p4558_p4 = pmov %p4557_p2 }
  0x8d   : > { %p4559_p1 = pmov %p4557_p2 }
  0x8e   : > { %3477 = dma.done.wait (%p4558_p4), [#allocation15], 1024  }
  0x8f   : > { %3479 = vsyncadd (%p4559_p1), [#allocation15], 4294966272  ;;  %v791_v0 = vld [vmem:[#allocation8 + $0x18] sm:$0xff]  ;;  %v790_v1 = vld [vmem:[#allocation8 + $0x10] sm:$0xff]  ;;  %vm792_vm0 = vcmask 261120   ;;  %s3512_s22 = smov 96  }
  0x90   : > { %808 = vmatpush.msra.mxu0 %v791_v0  ;;  %v789_v2 = vld [vmem:[#allocation8 + $0x8] sm:$0xff]  ;;  %v788_v3 = vld [vmem:[#allocation8] sm:$0xff]  ;;  %v785_v4 = vld [vmem:[%s661_s4] sm:$0xff]  ;;  %s3513_s15 = smov 120   ;;  %s3514_s27 = smov 112   ;;  %vm834_vm1 = vcmask 1047556  }
  0x91   : > { %s3515_s26 = smov 104   ;;  %v3516_v9 = vmov 1983009808   ;;  %v3517_v20 = vmov 1934713408   ;;  %vm1188_vm2 = vcmask 64512  }
  0x92   : > { %809 = vmatpush.msra.mxu0 %v790_v1  ;;  %v839_v10 = vunpack.c.l.s4 %v3516_v9  ;;  %v863_v21 = vunpack.c.l.s4 %v3517_v20  ;;  %s3518_s12 = smov 64   ;;  %s2840_s23 = sshll.u32 %s3811_s24, 5  ;;  %vm1560_vm3 = vcmask 130048   ;;  %vm1562_vm4 = vcmask 195584  }
  0x93   : > { %s4043_s18 = scalar_lea.vmem [#allocation18], %s2840_s23  ;;  %s3519_s30 = smov 16  }
  0x94   : > { %810 = vmatpush.msra.mxu0 %v789_v2  ;;  %v3868_v13 = vunpack.c.0.s8 %v839_v10  ;;  %v3884_v27 = vunpack.c.0.s8 %v863_v21  ;;  %s4516_s16 = smov 8   ;;  %s3521_s2 = smov 24  }
  0x95   : > { %s2882_s13 = sshll.u32 %s3643_s20, 5  ;;  %s4563_s21 = sld [smem:[#allocation45_spill]] }
  0x96   : > { %811 = vmatpush.msra.mxu0 %v788_v3 }
  0x97   : > { %2842 = vmatmul.msk.f32.vlgmr.msra.gmra.mxu0 %vm792_vm0, %v785_v4 }
 0x114   : > { %v3844_v5 = vpop.f32.mrf.mxu0 }
 0x115   : > { %944 = vrot.lane.b32.xlu2 %v3844_v5, %s3512_s22  ;;  %824 = vrot.lane.b32.xlu1 %v3844_v5, %s3513_s15  ;;  %v836_v12 = vrot.slane %v3844_v5, 4 }
 0x116   : > { %827 = vrot.lane.b32.xlu0 %v3844_v5, %s3514_s27 }
 0x11e   : > { %830 = vrot.lane.b32.xlu0 %v3844_v5, %s3515_s26 }
 0x16f   : > { %v945_v31 = vpop.permute.xlu2 %944 }
 0x170   : > { %v958_v46 = vrot.slane %v945_v31, 4 }
 0x187   : > { %v3854_v6 = vpop.permute.xlu1 %824 }
 0x188   : > { %v3856_v7 = vpop.permute.xlu0 %827  ;;  %946 = vrot.lane.b32.xlu0 %v3854_v6, %s3512_s22  ;;  %v848_v14 = vrot.slane %v3854_v6, 4 }
 0x189   : > { %948 = vrot.lane.b32.xlu1 %v3856_v7, %s3512_s22  ;;  %v833_v11 = vrot.slane %v3856_v7, 4  ;;  %v837_v15 = vsel %vm834_vm1, %v3856_v7, %v836_v12 }
 0x18a   : > { %v845_v19 = vperm.slane %v837_v15, %v3868_v13 }
 0x18b   : > { %v835_v17 = vsel %vm834_vm1, %v833_v11, %v3844_v5 }
 0x18c   : > { %v841_v23 = vperm.slane %v835_v17, %v3868_v13  ;;  %v872_v25 = vrot.slane %v845_v19, 4 }
 0x18e   : > { %v860_v28 = vrot.slane %v841_v23, 4 }
 0x190   : > { %v3862_v8 = vpop.permute.xlu0 %830 }
 0x191   : > { %950 = vrot.lane.b32.xlu2 %v3862_v8, %s3512_s22  ;;  %v846_v16 = vrot.slane %v3862_v8, 4  ;;  %v849_v18 = vsel %vm834_vm1, %v3862_v8, %v848_v14 }
 0x192   : > { %v857_v24 = vperm.slane %v849_v18, %v3868_v13 }
 0x193   : > { %v847_v22 = vsel %vm834_vm1, %v846_v16, %v3854_v6 }
 0x194   : > { %v853_v26 = vperm.slane %v847_v22, %v3868_v13  ;;  %v870_v29 = vrot.slane %v857_v24, 4  ;;  %v873_v30 = vsel %vm834_vm1, %v857_v24, %v872_v25 }
 0x195   : > { %v881_v34 = vperm.slane %v873_v30, %v3884_v27 }
 0x196   : > { %v858_v32 = vrot.slane %v853_v26, 4  ;;  %v861_v33 = vsel %vm834_vm1, %v853_v26, %v860_v28  ;;  %v871_v35 = vsel %vm834_vm1, %v870_v29, %v845_v19 }
 0x197   : > { %v869_v36 = vperm.slane %v861_v33, %v3884_v27  ;;  %v877_v38 = vperm.slane %v871_v35, %v3884_v27  ;;  %v888_v39 = vrot.slane %v881_v34, 4 }
 0x198   : > { %v859_v37 = vsel %vm834_vm1, %v858_v32, %v841_v23 }
 0x199   : > { %v865_v40 = vperm.slane %v859_v37, %v3884_v27  ;;  %v884_v41 = vrot.slane %v869_v36, 4  ;;  %v886_v43 = vrot.slane %v877_v38, 4  ;;  %v889_v44 = vsel %vm834_vm1, 0.0, %v888_v39 }
 0x19a   : > { %v906_v50 = vrot.slane %v889_v44, 4  ;;  %v901_v54 = vsel %vm834_vm1, %v888_v39, %v877_v38 }
 0x19b   : > { %v882_v48 = vrot.slane %v865_v40, 4  ;;  %v885_v49 = vsel %vm834_vm1, 0.0, %v884_v41  ;;  %v887_v58 = vsel %vm834_vm1, 0.0, %v886_v43  ;;  %v890_v61 = vsel %vm834_vm1, %v884_v41, %v865_v40 }
 0x19c   : > { %v895_v62 = vrot.slane %v885_v49, 4  ;;  %v894_v10 = vperm.slane %v890_v61, %v3868_v13  ;;  %v905_v11 = vperm.slane %v901_v54, %v3868_v13  ;;  %v907_v12 = vsel %vm834_vm1, %v906_v50, %v887_v58 }
 0x19d   : > { %v883_v2 = vsel %vm834_vm1, 0.0, %v882_v48  ;;  %v911_v23 = vperm.slane %v907_v12, %v3868_v13 }
 0x19e   : > { %v896_v17 = vsel %vm834_vm1, %v895_v62, %v883_v2  ;;  %v926_v28 = vrot.slane %v905_v11, 4  ;;  %v914_v30 = vrot.slane %v894_v10, 4 }
 0x19f   : > { %v900_v26 = vperm.slane %v896_v17, %v3868_v13  ;;  %v924_v38 = vrot.slane %v911_v23, 4 }
 0x1a0   : > { %v927_v41 = vsel %vm834_vm1, %v911_v23, %v926_v28  ;;  %v3968_v28 = vld [vmem:[%s681_s17] sm:$0xff]  ;;  %s4319_s17 = scalar_lea.vmem [#allocation20], %s2840_s23  ;;  %s4408_s23 = scalar_lea.sflag [#allocation19], %s667_s8 }
 0x1eb   : > { %v951_v42 = vpop.permute.xlu2 %950 }
 0x1ec   : > { %v968_v45 = vrot.slane %v951_v42, 4 }
 0x1fa   : > { %v947_v47 = vpop.permute.xlu0 %946 }
 0x1fb   : > { %v949_v51 = vpop.permute.xlu1 %948  ;;  %v969_v52 = vsel %vm834_vm1, %v968_v45, %v947_v47  ;;  %v970_v53 = vrot.slane %v947_v47, 4 }
 0x1fc   : > { %v956_v55 = vrot.slane %v949_v51, 4  ;;  %v959_v56 = vsel %vm834_vm1, %v949_v51, %v958_v46  ;;  %v975_v57 = vperm.slane %v969_v52, %v3868_v13  ;;  %v925_v51 = vsel %vm834_vm1, %v924_v38, %v905_v11 }
 0x1fd   : > { %v967_v59 = vperm.slane %v959_v56, %v3868_v13  ;;  %v971_v60 = vsel %vm834_vm1, %v951_v42, %v970_v53  ;;  %v912_v42 = vrot.slane %v900_v26, 4  ;;  %v931_v62 = vperm.slane %v925_v51, %v3884_v27 }
 0x1fe   : > { %v957_v63 = vsel %vm834_vm1, %v956_v55, %v945_v31  ;;  %v979_v0 = vperm.slane %v971_v60, %v3868_v13  ;;  %v980_v1 = vrot.slane %v975_v57, 4  ;;  %v935_v55 = vperm.slane %v927_v41, %v3884_v27 }
 0x1ff   : > { %v963_v3 = vperm.slane %v957_v63, %v3868_v13  ;;  %v994_v4 = vrot.slane %v967_v59, 4  ;;  %v913_v58 = vsel %vm834_vm1, %v912_v42, %v894_v10 }
 0x200   : > { %v992_v9 = vrot.slane %v979_v0, 4 }
 0x201   : > { %v982_v14 = vrot.slane %v963_v3, 4  ;;  %v981_v15 = vsel %vm834_vm1, %v980_v1, %v963_v3  ;;  %v995_v16 = vsel %vm834_vm1, %v979_v0, %v994_v4  ;;  %v940_v4 = vrot.slane %v935_v55, 4 }
 0x202   : > { %v987_v18 = vperm.slane %v981_v15, %v3884_v27  ;;  %v993_v19 = vsel %vm834_vm1, %v992_v9, %v967_v59  ;;  %v1003_v20 = vperm.slane %v995_v16, %v3884_v27  ;;  %v919_v9 = vperm.slane %v913_v58, %v3884_v27 }
 0x203   : > { %v983_v21 = vsel %vm834_vm1, %v975_v57, %v982_v14  ;;  %v999_v22 = vperm.slane %v993_v19, %v3884_v27  ;;  %v915_v57 = vsel %vm834_vm1, %v900_v26, %v914_v30  ;;  %v936_v15 = vrot.slane %v931_v62, 4 }
 0x204   : > { %v991_v24 = vperm.slane %v983_v21, %v3884_v27  ;;  %v1010_v25 = vrot.slane %v1003_v20, 4  ;;  %v1004_v31 = vrot.slane %v987_v18, 4  ;;  %v923_v3 = vperm.slane %v915_v57, %v3884_v27 }
 0x205   : > { %v1008_v29 = vrot.slane %v999_v22, 4  ;;  %v938_v20 = vrot.slane %v919_v9, 4 }
 0x206   : > { %v1006_v32 = vrot.slane %v991_v24, 4  ;;  %v1011_v33 = vsel %vm834_vm1, 0.0, %v1010_v25  ;;  %v1023_v34 = vsel %vm834_vm1, %v1010_v25, %v999_v22  ;;  %v1005_v47 = vsel %vm834_vm1, 0.0, %v1004_v31 }
 0x207   : > { %v1028_v35 = vrot.slane %v1011_v33, 4  ;;  %v1009_v36 = vsel %vm834_vm1, 0.0, %v1008_v29  ;;  %v1027_v37 = vperm.slane %v1023_v34, %v3868_v13  ;;  %v941_v19 = vsel %vm834_vm1, %v940_v4, %v923_v3 }
 0x208   : > { %v1007_v39 = vsel %vm834_vm1, 0.0, %v1006_v32  ;;  %v1012_v40 = vsel %vm834_vm1, %v1006_v32, %v987_v18  ;;  %v937_v22 = vsel %vm834_vm1, %v936_v15, %v919_v9  ;;  %v939_v23 = vsel %vm834_vm1, %v931_v62, %v938_v20 }
 0x209   : > { %v1017_v43 = vrot.slane %v1007_v39, 4  ;;  %v1016_v44 = vperm.slane %v1012_v40, %v3868_v13  ;;  %v1029_v45 = vsel %vm834_vm1, %v1028_v35, %v1009_v36  ;;  %v1048_v46 = vrot.slane %v1027_v37, 4 }
 0x20a   : > { %v1033_v48 = vperm.slane %v1029_v45, %v3868_v13  ;;  %v942_v24 = vrot.slane %v923_v3, 4  ;;  %v3030_v45 = vpack.i.bf16 %v3862_v8, %v3856_v7 }
 0x20b   : > { %v1018_v49 = vsel %vm834_vm1, %v1017_v43, %v1005_v47  ;;  %v1036_v50 = vrot.slane %v1016_v44, 4 }
 0x20c   : > { %v1022_v52 = vperm.slane %v1018_v49, %v3868_v13  ;;  %v1049_v53 = vsel %vm834_vm1, %v1033_v48, %v1048_v46  ;;  %v1046_v54 = vrot.slane %v1033_v48, 4  ;;  %v943_v25 = vsel %vm834_vm1, %v935_v55, %v942_v24 }
 0x20d   : > { %v1057_v56 = vperm.slane %v1049_v53, %v3884_v27 }
 0x20e   : > { %v1037_v59 = vsel %vm834_vm1, %v1022_v52, %v1036_v50  ;;  %v1034_v60 = vrot.slane %v1022_v52, 4  ;;  %v1047_v61 = vsel %vm834_vm1, %v1046_v54, %v1027_v37 }
 0x20f   : > { %v1045_v63 = vperm.slane %v1037_v59, %v3884_v27  ;;  %v1062_v0 = vrot.slane %v1057_v56, 4  ;;  %v1053_v1 = vperm.slane %v1047_v61, %v3884_v27 }
 0x210   : > { %v1035_v2 = vsel %vm834_vm1, %v1034_v60, %v1016_v44  ;;  %v3025_v44 = vpack.i.bf16 %v3854_v6, %v3844_v5 }
 0x211   : > { %v1063_v10 = vsel %vm834_vm1, %v1062_v0, %v1045_v63  ;;  %v1041_v11 = vperm.slane %v1035_v2, %v3884_v27  ;;  %v1058_v12 = vrot.slane %v1053_v1, 4  ;;  %v1064_v14 = vrot.slane %v1045_v63, 4 }
 0x212   : > { %2847 = vmatpush.xpose.msk.msra.mxu3 %vm1188_vm2, %v1063_v10 }
 0x213   : > { %v1059_v16 = vsel %vm834_vm1, %v1058_v12, %v1041_v11  ;;  %v1065_v17 = vsel %vm834_vm1, %v1057_v56, %v1064_v14  ;;  %v1060_v18 = vrot.slane %v1041_v11, 4 }
 0x214   : > { %2843 = vmatpush.xpose.msk.msra.mxu1 %vm1188_vm2, %v1059_v16 }
 0x215   : > { %2848 = vmatmul.msk.f32.vlgmr.msra.gmra.mxu3 %vm1188_vm2, %v941_v19  ;;  %v1061_v21 = vsel %vm834_vm1, %v1053_v1, %v1060_v18 }
 0x216   : > { %2845 = vmatpush.xpose.msk.msra.mxu2 %vm1188_vm2, %v1061_v21 }
 0x217   : > { %2844 = vmatmul.msk.f32.vlgmr.msra.gmra.mxu1 %vm1188_vm2, %v937_v22 }
 0x218   : > { %2849 = vmatpush.xpose.msk.msrb.mxu1 %vm1188_vm2, %v1065_v17 }
 0x219   : > { %2846 = vmatmul.msk.f32.vlgmr.msra.gmra.mxu2 %vm1188_vm2, %v939_v23 }
 0x21f   : > { %2850 = vmatmul.msk.f32.vlgmr.msrb.gmra.mxu1 %vm1188_vm2, %v943_v25 }
 0x294   : > { %v1212_v26 = vpop.f32.mrf.mxu1 }
 0x295   : > { %v1293_v29 = vmul.f32 5.656854, %v1212_v26 }
 0x297   : > { %v1297_v30 = vadd.f32 %v1293_v29, %v3968_v28 }
 0x298   : > { %v1264_v31 = vpop.f32.mrf.mxu3 }
 0x299   : > { %v1295_v32 = vmul.f32 5.656854, %v1264_v31  ;;  %v1301_v33 = vsel %vm1188_vm2, %v1297_v30, -inf }
 0x29a   : > { %1302 = vmax.xlane.f32.xlu1 %v1301_v33 }
 0x29b   : > { %v1299_v34 = vadd.f32 %v1295_v32, %v3968_v28 }
 0x29c   : > { %v1238_v35 = vpop.f32.mrf.mxu2  ;;  %v1290_v38 = vpop.f32.mrf.mxu1 }
 0x29d   : > { %v1294_v36 = vmul.f32 5.656854, %v1238_v35  ;;  %v1307_v37 = vsel %vm1188_vm2, %v1299_v34, -inf  ;;  %v1296_v40 = vmul.f32 5.656854, %v1290_v38 }
 0x29e   : > { %1308 = vmax.xlane.f32.xlu0 %v1307_v37 }
 0x29f   : > { %v1298_v39 = vadd.f32 %v1294_v36, %v3968_v28  ;;  %v1300_v42 = vadd.f32 %v1296_v40, %v3968_v28 }
 0x2a1   : > { %v1304_v41 = vsel %vm1188_vm2, %v1298_v39, -inf  ;;  %v1310_v43 = vsel %vm1188_vm2, %v1300_v42, -inf }
 0x2a2   : > { %1305 = vmax.xlane.f32.xlu2 %v1304_v41 }
 0x2aa   : > { %1311 = vmax.xlane.f32.xlu2 %v1310_v43 }
 0x2b3   : > { %3026 = vrot.lane.b32.xlu1 %v3025_v44, %s3518_s12 }
 0x2c2   : > { %3031 = vrot.lane.b32.xlu2 %v3030_v45, %s3518_s12  ;;  %s4560_s12 = sld [smem:[#allocation41_spill]] }
 0x30d   : > { %v1303_v46 = vpop.xlane.xlu1 %1302 }
 0x30e   : > { %v1313_v47 = vsub.f32 %v1297_v30, %v1303_v46 }
 0x310   : > { %v1317_v48 = vmul.f32 1.442695, %v1313_v47 }
 0x311   : > { %v1309_v49 = vpop.xlane.xlu0 %1308 }
 0x312   : > { %3052 = vpow2.f32 %v1317_v48  ;;  %v1315_v53 = vsub.f32 %v1299_v34, %v1309_v49 }
 0x314   : > { %v1321_v55 = vmul.f32 1.442695, %v1315_v53 }
 0x315   : > { %v1306_v50 = vpop.xlane.xlu2 %1305 }
 0x316   : > { %v1314_v51 = vsub.f32 %v1298_v39, %v1306_v50 }
 0x318   : > { %v3982_v52 = vpop.eup %3052  ;;  %v1319_v54 = vmul.f32 1.442695, %v1314_v51 }
 0x319   : > { %v1325_v6 = vsel %vm1188_vm2, %v3982_v52, 0.0 }
 0x31a   : > { %3054 = vpow2.f32 %v1319_v54  ;;  %1326 = vadd.xlane.f32.xlu0 %v1325_v6 }
 0x31b   : > { %3056 = vpow2.f32 %v1321_v55 }
 0x31d   : > { %v1312_v56 = vpop.xlane.xlu2 %1311 }
 0x31e   : > { %v1316_v7 = vsub.f32 %v1300_v42, %v1312_v56 }
 0x320   : > { %v3986_v8 = vpop.eup %3054  ;;  %v1323_v57 = vmul.f32 1.442695, %v1316_v7 }
 0x321   : > { %v1328_v58 = vsel %vm1188_vm2, %v3986_v8, 0.0  ;;  %v3990_v61 = vpop.eup %3056 }
 0x322   : > { %3058 = vpow2.f32 %v1323_v57  ;;  %1329 = vadd.xlane.f32.xlu0 %v1328_v58  ;;  %v1331_v11 = vsel %vm1188_vm2, %v3990_v61, 0.0 }
 0x325   : > { %v3027_v59 = vpop.permute.xlu1 %3026  ;;  %v3032_v60 = vpop.permute.xlu2 %3031 }
 0x326   : > { %v3029_v62 = vunpack.i.h.bf16 %v3027_v59  ;;  %v3028_v63 = vunpack.i.l.bf16 %v3027_v59  ;;  %v3034_v0 = vunpack.i.h.bf16 %v3032_v60  ;;  %v3033_v1 = vunpack.i.l.bf16 %v3032_v60 }
 0x328   : > { %v3992_v2 = vpop.eup %3058  ;;  %v1092_v3 = vrot.slane %v3029_v62, 4  ;;  %v1080_v4 = vrot.slane %v3028_v63, 4  ;;  %v1090_v9 = vrot.slane %v3034_v0, 4  ;;  %v1078_v10 = vrot.slane %v3033_v1, 4 }
 0x329   : > { %v1334_v12 = vsel %vm1188_vm2, %v3992_v2, 0.0 }
 0x32a   : > { %v1091_v14 = vsel %vm834_vm1, %v1090_v9, %v3029_v62  ;;  %v1093_v15 = vsel %vm834_vm1, %v3034_v0, %v1092_v3  ;;  %v1079_v16 = vsel %vm834_vm1, %v1078_v10, %v3028_v63  ;;  %v1081_v17 = vsel %vm834_vm1, %v3033_v1, %v1080_v4  ;;  %1332 = vadd.xlane.f32.xlu0 %v1331_v11 }
 0x32b   : > { %v1097_v18 = vperm.slane %v1091_v14, %v3868_v13  ;;  %v1101_v19 = vperm.slane %v1093_v15, %v3868_v13  ;;  %v1085_v20 = vperm.slane %v1079_v16, %v3868_v13  ;;  %v1089_v21 = vperm.slane %v1081_v17, %v3868_v13  ;;  %1335 = vadd.xlane.f32.xlu1 %v1334_v12 }
 0x32d   : > { %v1102_v22 = vrot.slane %v1097_v18, 4  ;;  %v1114_v23 = vrot.slane %v1101_v19, 4  ;;  %v1104_v24 = vrot.slane %v1085_v20, 4  ;;  %v1116_v25 = vrot.slane %v1089_v21, 4 }
 0x32f   : > { %v1103_v26 = vsel %vm834_vm1, %v1102_v22, %v1085_v20  ;;  %v1105_v29 = vsel %vm834_vm1, %v1097_v18, %v1104_v24  ;;  %v1115_v30 = vsel %vm834_vm1, %v1114_v23, %v1089_v21  ;;  %v1117_v31 = vsel %vm834_vm1, %v1101_v19, %v1116_v25 }
 0x330   : > { %v1109_v32 = vperm.slane %v1103_v26, %v3884_v27  ;;  %v1113_v33 = vperm.slane %v1105_v29, %v3884_v27  ;;  %v1121_v34 = vperm.slane %v1115_v30, %v3884_v27  ;;  %v1125_v35 = vperm.slane %v1117_v31, %v3884_v27 }
 0x332   : > { %v1128_v36 = vrot.slane %v1113_v33, 4  ;;  %v1130_v37 = vrot.slane %v1121_v34, 4  ;;  %v1132_v38 = vrot.slane %v1125_v35, 4  ;;  %v1126_v39 = vrot.slane %v1109_v32, 4 }
 0x334   : > { %v1133_v40 = vsel %vm834_vm1, 0.0, %v1132_v38  ;;  %v1129_v41 = vsel %vm834_vm1, 0.0, %v1128_v36  ;;  %v1134_v43 = vsel %vm834_vm1, %v1128_v36, %v1109_v32  ;;  %v1145_v45 = vsel %vm834_vm1, %v1132_v38, %v1121_v34 }
 0x335   : > { %v1150_v42 = vrot.slane %v1133_v40, 4  ;;  %v1139_v44 = vrot.slane %v1129_v41, 4  ;;  %v1127_v46 = vsel %vm834_vm1, 0.0, %v1126_v39  ;;  %v1131_v47 = vsel %vm834_vm1, 0.0, %v1130_v37 }
 0x336   : > { %v1138_v48 = vperm.slane %v1134_v43, %v3868_v13  ;;  %v1149_v49 = vperm.slane %v1145_v45, %v3868_v13 }
 0x337   : > { %v1140_v50 = vsel %vm834_vm1, %v1139_v44, %v1127_v46  ;;  %v1151_v51 = vsel %vm834_vm1, %v1150_v42, %v1131_v47 }
 0x338   : > { %v1144_v53 = vperm.slane %v1140_v50, %v3868_v13  ;;  %v1155_v54 = vperm.slane %v1151_v51, %v3868_v13  ;;  %v1158_v6 = vrot.slane %v1138_v48, 4  ;;  %v1170_v55 = vrot.slane %v1149_v49, 4 }
 0x33a   : > { %v1159_v56 = vsel %vm834_vm1, %v1144_v53, %v1158_v6  ;;  %v1171_v7 = vsel %vm834_vm1, %v1155_v54, %v1170_v55  ;;  %v1156_v57 = vrot.slane %v1144_v53, 4  ;;  %v1168_v58 = vrot.slane %v1155_v54, 4 }
 0x33b   : > { %v1167_v59 = vperm.slane %v1159_v56, %v3884_v27  ;;  %v1179_v60 = vperm.slane %v1171_v7, %v3884_v27 }
 0x33c   : > { %v1157_v62 = vsel %vm834_vm1, %v1156_v57, %v1138_v48  ;;  %v1169_v63 = vsel %vm834_vm1, %v1168_v58, %v1149_v49 }
 0x33d   : > { %v1184_v0 = vrot.slane %v1179_v60, 4  ;;  %v1186_v1 = vrot.slane %v1167_v59, 4  ;;  %v1163_v3 = vperm.slane %v1157_v62, %v3884_v27  ;;  %v1175_v4 = vperm.slane %v1169_v63, %v3884_v27 }
 0x33f   : > { %v1185_v9 = vsel %vm834_vm1, %v1184_v0, %v1167_v59  ;;  %v1187_v10 = vsel %vm834_vm1, %v1179_v60, %v1186_v1  ;;  %v1180_v11 = vrot.slane %v1175_v4, 4  ;;  %v1182_v12 = vrot.slane %v1163_v3, 4 }
 0x340   : > { %1409 = vmatpush.msrb.mxu0 %v1185_v9  ;;  %1432 = vmatpush.msra.mxu1 %v1187_v10 }
 0x341   : > { %v1181_v14 = vsel %vm834_vm1, %v1180_v11, %v1163_v3  ;;  %v1183_v15 = vsel %vm834_vm1, %v1175_v4, %v1182_v12 }
 0x342   : > { %1363 = vmatpush.msrb.mxu2 %v1181_v14  ;;  %1386 = vmatpush.msrb.mxu3 %v1183_v15 }
 0x38d   : > { %v1327_v16 = vpop.xlane.xlu0 %1326 }
 0x38e   : > { %3060 = vrcp.f32 %v1327_v16 }
 0x394   : > { %v3061_v17 = vpop.eup %3060 }
 0x395   : > { %v1330_v18 = vpop.xlane.xlu0 %1329  ;;  %v1341_v19 = vmul.f32 %v3061_v17, %v3982_v52 }
 0x396   : > { %3062 = vrcp.f32 %v1330_v18 }
 0x397   : > { %2851 = vmatmul.msk.f32.vlgmr.msrb.gmra.mxu2 %vm1188_vm2, %v1341_v19  ;;  %1628 = vst.msk [vmem:[%s4043_s18] sm:$0xff] %vm1188_vm2, %v1341_v19 }
 0x39c   : > { %v3063_v20 = vpop.eup %3062 }
 0x39d   : > { %v1333_v21 = vpop.xlane.xlu0 %1332  ;;  %v1342_v22 = vmul.f32 %v3063_v20, %v3986_v8 }
 0x39e   : > { %3064 = vrcp.f32 %v1333_v21  ;;  %v1336_v23 = vpop.xlane.xlu1 %1335 }
 0x39f   : > { %3066 = vrcp.f32 %v1336_v23  ;;  %2852 = vmatmul.msk.f32.vlgmr.msrb.gmra.mxu3 %vm1188_vm2, %v1342_v22  ;;  %1629 = vst.msk [vmem:[%s4043_s18 + $0x8] sm:$0xff] %vm1188_vm2, %v1342_v22 }
 0x3a4   : > { %v3065_v52 = vpop.eup %3064 }
 0x3a5   : > { %v3067_v24 = vpop.eup %3066  ;;  %v1343_v25 = vmul.f32 %v3065_v52, %v3990_v61 }
 0x3a6   : > { %v1344_v26 = vmul.f32 %v3067_v24, %v3992_v2 }
 0x3a7   : > { %2853 = vmatmul.msk.f32.vlgmr.msrb.gmra.mxu0 %vm1188_vm2, %v1343_v25  ;;  %1630 = vst.msk [vmem:[%s4043_s18 + $0x10] sm:$0xff] %vm1188_vm2, %v1343_v25 }
 0x3a8   : > { %1631 = vst.msk [vmem:[%s4043_s18 + $0x18] sm:$0xff] %vm1188_vm2, %v1344_v26  ;;  %2854 = vmatmul.msk.f32.vlgmr.msra.gmra.mxu1 %vm1188_vm2, %v1344_v26 }
 0x41a   : > { %v1365_v8 = vpop.f32.mrf.mxu2 }
 0x41b   : > { %v1439_v30 = vrot.slane %v1365_v8, 4 }
 0x422   : > { %v1388_v29 = vpop.f32.mrf.mxu3 }
 0x423   : > { %v1451_v31 = vrot.slane %v1388_v29, 4 }
 0x424   : > { %v1411_v32 = vpop.f32.mrf.mxu0 }
 0x425   : > { %v1437_v33 = vrot.slane %v1411_v32, 4  ;;  %v1440_v34 = vsel %vm834_vm1, %v1411_v32, %v1439_v30  ;;  %v1434_v35 = vpop.f32.mrf.mxu1 }
 0x426   : > { %v1448_v61 = vperm.slane %v1440_v34, %v3868_v13  ;;  %v1449_v2 = vrot.slane %v1434_v35, 4  ;;  %v1452_v36 = vsel %vm834_vm1, %v1434_v35, %v1451_v31  ;;  %v819_v34 = vld [vmem:[#allocation10 + $0x18] sm:$0xff]  ;;  %v818_v35 = vld [vmem:[#allocation10 + $0x10] sm:$0xff] }
 0x427   : > { %v1438_v37 = vsel %vm834_vm1, %v1437_v33, %v1365_v8  ;;  %v1460_v38 = vperm.slane %v1452_v36, %v3868_v13  ;;  %1582 = vmatpush.msra.mxu2 %v819_v34 }
 0x428   : > { %v1444_v39 = vperm.slane %v1438_v37, %v3868_v13  ;;  %v1475_v40 = vrot.slane %v1448_v61, 4  ;;  %v1450_v41 = vsel %vm834_vm1, %v1449_v2, %v1388_v29  ;;  %v816_v2 = vld [vmem:[#allocation10] sm:$0xff] }
 0x429   : > { %v1456_v42 = vperm.slane %v1450_v41, %v3868_v13  ;;  %v1473_v43 = vrot.slane %v1460_v38, 4  ;;  %1583 = vmatpush.msra.mxu2 %v818_v35 }
 0x42a   : > { %v1463_v44 = vrot.slane %v1444_v39, 4  ;;  %v1476_v45 = vsel %vm834_vm1, %v1460_v38, %v1475_v40 }
 0x42b   : > { %v1461_v46 = vrot.slane %v1456_v42, 4  ;;  %v1474_v47 = vsel %vm834_vm1, %v1473_v43, %v1448_v61  ;;  %v1484_v48 = vperm.slane %v1476_v45, %v3884_v27  ;;  %v817_v61 = vld [vmem:[#allocation10 + $0x8] sm:$0xff] }
 0x42c   : > { %v1464_v49 = vsel %vm834_vm1, %v1456_v42, %v1463_v44  ;;  %v1480_v50 = vperm.slane %v1474_v47, %v3884_v27  ;;  %1584 = vmatpush.msra.mxu2 %v817_v61  ;;  %v3045_v42 = vld [vmem:[%s4480_s5] ss:$0 sm:$0xff]  ;;  %v1662_v47 = vld [vmem:[#allocation13 + $0x18] sm:$0xff] }
 0x42d   : > { %v1462_v51 = vsel %vm834_vm1, %v1461_v46, %v1444_v39  ;;  %v1472_v53 = vperm.slane %v1464_v49, %v3884_v27  ;;  %v1491_v54 = vrot.slane %v1484_v48, 4  ;;  %v1661_v48 = vld [vmem:[#allocation13 + $0x10] sm:$0xff]  ;;  %1678 = vmatpush.msra.mxu0 %v1662_v47  ;;  %v3522_v49 = vmov 32.0  }
 0x42e   : > { %v1468_v6 = vperm.slane %v1462_v51, %v3884_v27  ;;  %v1489_v55 = vrot.slane %v1480_v50, 4  ;;  %1585 = vmatpush.msra.mxu2 %v816_v2  ;;  %3068 = vrcp.f32 %v3522_v49  ;;  %v1659_v51 = vld [vmem:[#allocation13] sm:$0xff] }
 0x42f   : > { %v1487_v56 = vrot.slane %v1472_v53, 4  ;;  %v1492_v7 = vsel %vm834_vm1, 0.0, %v1491_v54  ;;  %v1504_v57 = vsel %vm834_vm1, %v1491_v54, %v1480_v50  ;;  %v1660_v50 = vld [vmem:[#allocation13 + $0x8] sm:$0xff]  ;;  %1679 = vmatpush.msra.mxu0 %v1661_v48 }
 0x430   : > { %v1485_v58 = vrot.slane %v1468_v6, 4  ;;  %v1508_v59 = vperm.slane %v1504_v57, %v3868_v13  ;;  %v1509_v60 = vrot.slane %v1492_v7, 4  ;;  %v1490_v63 = vsel %vm834_vm1, 0.0, %v1489_v55  ;;  %v786_v53 = vld [vmem:[%s671_s3] sm:$0xff]  ;;  %s2557_s3 = scalar_lea.hbm %s4563_s21, %s2882_s13 }
 0x431   : > { %v1488_v62 = vsel %vm834_vm1, 0.0, %v1487_v56  ;;  %v1493_v0 = vsel %vm834_vm1, %v1487_v56, %v1468_v6  ;;  %1680 = vmatpush.msra.mxu0 %v1660_v50 }
 0x432   : > { %v1498_v1 = vrot.slane %v1488_v62, 4  ;;  %v1497_v3 = vperm.slane %v1493_v0, %v3868_v13  ;;  %v1510_v4 = vsel %vm834_vm1, %v1509_v60, %v1490_v63  ;;  %v1486_v9 = vsel %vm834_vm1, 0.0, %v1485_v58  ;;  %v1635_v0 = vld [vmem:[#allocation11 + $0x18] sm:$0xff] }
 0x433   : > { %v1514_v10 = vperm.slane %v1510_v4, %v3868_v13  ;;  %v1529_v11 = vrot.slane %v1508_v59, 4  ;;  %1681 = vmatpush.msra.mxu0 %v1659_v51  ;;  %1651 = vmatpush.msra.mxu3 %v1635_v0  ;;  %v1632_v4 = vld [vmem:[#allocation11] sm:$0xff] }
 0x434   : > { %v1499_v12 = vsel %vm834_vm1, %v1498_v1, %v1486_v9  ;;  %v1517_v14 = vrot.slane %v1497_v3, 4  ;;  %v3069_v54 = vpop.eup %3068  ;;  %2857 = vmatmul.msk.f32.vlgmr.msra.gmra.mxu0 %vm792_vm0, %v786_v53  ;;  %v1634_v1 = vld [vmem:[#allocation11 + $0x10] sm:$0xff] }
 0x435   : > { %v1503_v15 = vperm.slane %v1499_v12, %v3868_v13  ;;  %v1530_v16 = vsel %vm834_vm1, %v1514_v10, %v1529_v11  ;;  %v1527_v17 = vrot.slane %v1514_v10, 4  ;;  %v1595_v6 = vmul.f32 32.0, %v3069_v54  ;;  %1652 = vmatpush.msra.mxu3 %v1634_v1 }
 0x436   : > { %v1538_v18 = vperm.slane %v1530_v16, %v3884_v27  ;;  %vm1599_vm5 = vweird.f32 %v3069_v54 }
 0x437   : > { %v1518_v19 = vsel %vm834_vm1, %v1503_v15, %v1517_v14  ;;  %v1515_v20 = vrot.slane %v1503_v15, 4  ;;  %v1528_v21 = vsel %vm834_vm1, %v1527_v17, %v1508_v59 }
 0x438   : > { %v1526_v22 = vperm.slane %v1518_v19, %v3884_v27  ;;  %v1543_v23 = vrot.slane %v1538_v18, 4  ;;  %v1534_v52 = vperm.slane %v1528_v21, %v3884_v27  ;;  %v3046_v19 = vld [vmem:[%s4481_s6] ss:$0 sm:$0xff] }
 0x439   : > { %v1516_v24 = vsel %vm834_vm1, %v1515_v20, %v1497_v3  ;;  %v1633_v3 = vld [vmem:[#allocation11 + $0x8] sm:$0xff] }
 0x43a   : > { %v1544_v25 = vsel %vm834_vm1, %v1543_v23, %v1526_v22  ;;  %v1522_v26 = vperm.slane %v1516_v24, %v3884_v27  ;;  %v1539_v8 = vrot.slane %v1534_v52, 4  ;;  %v1545_v32 = vrot.slane %v1526_v22, 4  ;;  %1653 = vmatpush.msra.mxu3 %v1633_v3  ;;  %v3047_v22 = vld [vmem:[%s4482_s7] ss:$0 sm:$0xff] }
 0x43b   : > { %1552 = vrot.lane.b32.xlu0 %v1544_v25, %s3519_s30 }
 0x43c   : > { %v1541_v29 = vrot.slane %v1522_v26, 4  ;;  %v1540_v30 = vsel %vm834_vm1, %v1539_v8, %v1522_v26  ;;  %v1546_v33 = vsel %vm834_vm1, %v1538_v18, %v1545_v32  ;;  %1654 = vmatpush.msra.mxu3 %v1632_v4 }
 0x43e   : > { %v1542_v31 = vsel %vm834_vm1, %v1534_v52, %v1541_v29 }
 0x43f   : > { %1548 = vrot.lane.b32.xlu2 %v1542_v31, %s4516_s16 }
 0x447   : > { %1556 = vrot.lane.b32.xlu2 %v1546_v33, %s3521_s2 }
 0x499   : > { %v1549_v36 = vpop.permute.xlu2 %1548 }
 0x49a   : > { %v1559_v37 = vsel %vm1188_vm2, %v1540_v30, %v1549_v36 }
 0x4a1   : > { %v1557_v39 = vpop.permute.xlu2 %1556 }
 0x4ad   : > { %v1553_v38 = vpop.permute.xlu0 %1552 }
 0x4ae   : > { %v1561_v40 = vsel %vm1560_vm3, %v1559_v37, %v1553_v38 }
 0x4af   : > { %v1563_v41 = vsel %vm1562_vm4, %v1561_v40, %v1557_v39 }
 0x4b0   : > { %2855 = vmatmul.msk.f32.vlgmr.msra.gmra.mxu2 %vm792_vm0, %v1563_v41 }
 0x4b1   : > { %v4118_v63 = vpop.f32.mrf.mxu0 }
 0x4b2   : > { %1814 = vrot.lane.b32.xlu1 %v4118_v63, %s3513_s15  ;;  %v1825_v25 = vrot.slane %v4118_v63, 4 }
 0x4ba   : > { %1820 = vrot.lane.b32.xlu1 %v4118_v63, %s3515_s26 }
 0x524   : > { %v4138_v8 = vpop.permute.xlu1 %1814 }
 0x525   : > { %v1837_v32 = vrot.slane %v4138_v8, 4 }
 0x52c   : > { %v4147_v35 = vpop.permute.xlu1 %1820 }
 0x52d   : > { %v1835_v61 = vrot.slane %v4147_v35, 4  ;;  %v1838_v2 = vsel %vm834_vm1, %v4147_v35, %v1837_v32 }
 0x52e   : > { %v1846_v37 = vperm.slane %v1838_v2, %v3868_v13 }
 0x52f   : > { %v1836_v38 = vsel %vm834_vm1, %v1835_v61, %v4138_v8 }
 0x530   : > { %v1842_v39 = vperm.slane %v1836_v38, %v3868_v13  ;;  %v1859_v40 = vrot.slane %v1846_v37, 4 }
 0x533   : > { %v1587_v43 = vpop.f32.mrf.mxu2 }
 0x534   : > { %v1588_v44 = vadd.f32 %v3045_v42, %v1587_v43  ;;  %v1847_v43 = vrot.slane %v1842_v39, 4 }
 0x536   : > { %v1590_v45 = vadd.f32 %v1588_v44, %v3844_v5  ;;  %v1596_v5 = vsub.f32 1.0, %v1595_v6 }
 0x538   : > { %v1591_v46 = vsel %vm792_vm0, %v1590_v45, 0.0  ;;  %v1597_v55 = vmul.f32 %v3069_v54, %v1596_v5 }
 0x539   : > { %1592 = vadd.xlane.f32.xlu2 %v1591_v46 }
 0x53a   : > { %v1598_v56 = vadd.f32 %v3069_v54, %v1597_v55 }
 0x53c   : > { %v4114_v7 = vsel %vm1599_vm5, %v3069_v54, %v1598_v56 }
 0x551   : > { %1817 = vrot.lane.b32.xlu2 %v4118_v63, %s3514_s27 }
 0x5ac   : > { %v1593_v57 = vpop.xlane.xlu2 %1592 }
 0x5ad   : > { %v1601_v58 = vmul.f32 %v4114_v7, %v1593_v57 }
 0x5af   : > { %v1602_v59 = vsub.f32 %v1590_v45, %v1601_v58 }
 0x5b1   : > { %v1603_v60 = vmul.f32 %v1602_v59, %v1602_v59 }
 0x5b3   : > { %v1604_v62 = vsel %vm792_vm0, %v1603_v60, 0.0 }
 0x5b4   : > { %1605 = vadd.xlane.f32.xlu0 %v1604_v62  ;;  %v4134_v24 = vpop.permute.xlu2 %1817 }
 0x5b5   : > { %v1823_v26 = vrot.slane %v4134_v24, 4  ;;  %v1826_v29 = vsel %vm834_vm1, %v4134_v24, %v1825_v25 }
 0x5b6   : > { %v1834_v31 = vperm.slane %v1826_v29, %v3868_v13 }
 0x5b7   : > { %v1824_v30 = vsel %vm834_vm1, %v1823_v26, %v4118_v63 }
 0x5b8   : > { %v1830_v33 = vperm.slane %v1824_v30, %v3868_v13  ;;  %v1861_v34 = vrot.slane %v1834_v31, 4  ;;  %v1860_v45 = vsel %vm834_vm1, %v1859_v40, %v1834_v31 }
 0x5b9   : > { %v1866_v47 = vperm.slane %v1860_v45, %v3884_v27 }
 0x5ba   : > { %v1849_v36 = vrot.slane %v1830_v33, 4  ;;  %v1862_v41 = vsel %vm834_vm1, %v1846_v37, %v1861_v34  ;;  %v1848_v49 = vsel %vm834_vm1, %v1847_v43, %v1830_v33 }
 0x5bb   : > { %v1870_v42 = vperm.slane %v1862_v41, %v3884_v27  ;;  %v1854_v50 = vperm.slane %v1848_v49, %v3884_v27  ;;  %v1875_v53 = vrot.slane %v1866_v47, 4 }
 0x5bc   : > { %v1850_v44 = vsel %vm834_vm1, %v1842_v39, %v1849_v36 }
 0x5bd   : > { %v1858_v46 = vperm.slane %v1850_v44, %v3884_v27  ;;  %v1877_v48 = vrot.slane %v1870_v42, 4  ;;  %v1871_v55 = vrot.slane %v1854_v50, 4  ;;  %v1876_v57 = vsel %vm834_vm1, 0.0, %v1875_v53 }
 0x5bf   : > { %v1873_v51 = vrot.slane %v1858_v46, 4  ;;  %v1878_v54 = vsel %vm834_vm1, 0.0, %v1877_v48  ;;  %v1890_v6 = vsel %vm834_vm1, %v1877_v48, %v1866_v47  ;;  %v1872_v62 = vsel %vm834_vm1, 0.0, %v1871_v55 }
 0x5c0   : > { %v1895_v5 = vrot.slane %v1878_v54, 4  ;;  %v1894_v0 = vperm.slane %v1890_v6, %v3868_v13 }
 0x5c1   : > { %v1874_v56 = vsel %vm834_vm1, 0.0, %v1873_v51  ;;  %v1879_v60 = vsel %vm834_vm1, %v1873_v51, %v1854_v50 }
 0x5c2   : > { %v1884_v58 = vrot.slane %v1874_v56, 4  ;;  %v1883_v4 = vperm.slane %v1879_v60, %v3868_v13 }
 0x5c4   : > { %v1885_v3 = vsel %vm834_vm1, %v1884_v58, %v1872_v62 }
 0x627   : > { %v1606_v9 = vpop.xlane.xlu0 %1605 }
 0x628   : > { %v1607_v10 = vmul.f32 %v1606_v9, %v4114_v7  ;;  %v1889_v9 = vperm.slane %v1885_v3, %v3868_v13 }
 0x62a   : > { %v1608_v11 = vadd.f32 1e-06, %v1607_v10 }
 0x62c   : > { %3070 = vrsqrt.f32 %v1608_v11  ;;  %vm1615_vm7 = vweird.f32 %v1608_v11 }
 0x632   : > { %v3071_v12 = vpop.eup %3070 }
 0x633   : > { %v1610_v14 = vmul.f32 %v3071_v12, %v1608_v11  ;;  %vm1616_vm6 = vweird.f32 %v3071_v12  ;;  %v1901_v11 = vrot.slane %v1889_v9, 4 }
 0x634   : > { %vm1617_vm8 = vmor %vm1615_vm7, %vm1616_vm6 }
 0x635   : > { %v1611_v15 = vmul.f32 %v3071_v12, %v1610_v14  ;;  %v1915_v14 = vrot.slane %v1894_v0, 4 }
 0x637   : > { %v1612_v16 = vmul.f32 0.5, %v1611_v15 }
 0x639   : > { %v1613_v17 = vsub.f32 1.5, %v1612_v16  ;;  %v1902_v16 = vsel %vm834_vm1, %v1901_v11, %v1883_v4 }
 0x63b   : > { %v1614_v18 = vmul.f32 %v3071_v12, %v1613_v17  ;;  %v1903_v17 = vrot.slane %v1883_v4, 4 }
 0x63d   : > { %v1618_v20 = vsel %vm1617_vm8, %v3071_v12, %v1614_v18 }
 0x63e   : > { %v1619_v21 = vmul.f32 %v1618_v20, %v1602_v59  ;;  %v1896_v59 = vsel %vm834_vm1, %v1895_v5, %v1876_v57 }
 0x63f   : > { %v1900_v1 = vperm.slane %v1896_v59, %v3868_v13 }
 0x640   : > { %v1623_v23 = vmul.f32 %v3046_v19, %v1619_v21  ;;  %v1908_v19 = vperm.slane %v1902_v16, %v3884_v27 }
 0x641   : > { %v1913_v10 = vrot.slane %v1900_v1, 4  ;;  %v1916_v18 = vsel %vm834_vm1, %v1900_v1, %v1915_v14 }
 0x642   : > { %v1627_v52 = vadd.f32 %v3047_v22, %v1623_v23  ;;  %v1924_v21 = vperm.slane %v1916_v18, %v3884_v27  ;;  %v1904_v22 = vsel %vm834_vm1, %v1889_v9, %v1903_v17 }
 0x643   : > { %v1914_v12 = vsel %vm834_vm1, %v1913_v10, %v1894_v0  ;;  %v1912_v25 = vperm.slane %v1904_v22, %v3884_v27 }
 0x644   : > { %2856 = vmatmul.msk.f32.vlgmr.msra.gmra.mxu3 %vm792_vm0, %v1627_v52  ;;  %v1920_v15 = vperm.slane %v1914_v12, %v3884_v27  ;;  %v1927_v52 = vrot.slane %v1908_v19, 4  ;;  %v1929_v26 = vrot.slane %v1924_v21, 4 }
 0x645   : > { %v1931_v31 = vrot.slane %v1912_v25, 4 }
 0x646   : > { %v1925_v20 = vrot.slane %v1920_v15, 4  ;;  %v1928_v29 = vsel %vm834_vm1, %v1920_v15, %v1927_v52  ;;  %v1930_v30 = vsel %vm834_vm1, %v1929_v26, %v1912_v25 }
 0x647   : > { %2860 = vmatpush.xpose.msk.msrb.mxu2 %vm1188_vm2, %v1928_v29  ;;  %2862 = vmatpush.xpose.msk.msrb.mxu3 %vm1188_vm2, %v1930_v30  ;;  %v1932_v32 = vsel %vm834_vm1, %v1924_v21, %v1931_v31 }
 0x648   : > { %v1926_v23 = vsel %vm834_vm1, %v1925_v20, %v1908_v19  ;;  %2864 = vmatpush.xpose.msk.msrb.mxu0 %vm1188_vm2, %v1932_v32 }
 0x649   : > { %2858 = vmatpush.xpose.msk.msrb.mxu1 %vm1188_vm2, %v1926_v23 }
 0x6c7   : > { %v4192_v33 = vpop.f32.mrf.mxu3 }
 0x6c8   : > { %1697 = vrot.lane.b32.xlu1 %v4192_v33, %s3514_s27  ;;  %1694 = vrot.lane.b32.xlu0 %v4192_v33, %s3513_s15  ;;  %v1705_v2 = vrot.slane %v4192_v33, 4  ;;  %s2560_s15 = sshll.u32 %s2557_s3, 4  ;;  %s2561_s15 = int_to_ptr.hbm [resolvable:$true] %s2560_s15 }
 0x6d0   : > { %1700 = vrot.lane.b32.xlu1 %v4192_v33, %s3515_s26 }
 0x73a   : > { %v1698_v34 = vpop.permute.xlu1 %1697  ;;  %v1695_v37 = vpop.permute.xlu0 %1694 }
 0x73b   : > { %v1703_v61 = vrot.slane %v1698_v34, 4  ;;  %v1706_v36 = vsel %vm834_vm1, %v1698_v34, %v1705_v2  ;;  %v1717_v40 = vrot.slane %v1695_v37, 4 }
 0x73c   : > { %v1714_v39 = vperm.slane %v1706_v36, %v3868_v13 }
 0x73d   : > { %v1704_v38 = vsel %vm834_vm1, %v1703_v61, %v4192_v33 }
 0x73e   : > { %v1710_v41 = vperm.slane %v1704_v38, %v3868_v13  ;;  %v1741_v45 = vrot.slane %v1714_v39, 4 }
 0x740   : > { %v1729_v48 = vrot.slane %v1710_v41, 4 }
 0x742   : > { %v1701_v42 = vpop.permute.xlu1 %1700 }
 0x743   : > { %v1715_v43 = vrot.slane %v1701_v42, 4  ;;  %v1718_v44 = vsel %vm834_vm1, %v1701_v42, %v1717_v40 }
 0x744   : > { %v1726_v46 = vperm.slane %v1718_v44, %v3868_v13 }
 0x745   : > { %v1716_v47 = vsel %vm834_vm1, %v1715_v43, %v1695_v37 }
 0x746   : > { %v1722_v49 = vperm.slane %v1716_v47, %v3868_v13  ;;  %v1739_v50 = vrot.slane %v1726_v46, 4  ;;  %v1742_v51 = vsel %vm834_vm1, %v1726_v46, %v1741_v45 }
 0x747   : > { %v1750_v53 = vperm.slane %v1742_v51, %v3884_v27 }
 0x748   : > { %v1727_v54 = vrot.slane %v1722_v49, 4  ;;  %v1730_v6 = vsel %vm834_vm1, %v1722_v49, %v1729_v48  ;;  %v1740_v5 = vsel %vm834_vm1, %v1739_v50, %v1714_v39 }
 0x749   : > { %v1738_v55 = vperm.slane %v1730_v6, %v3884_v27  ;;  %v1746_v56 = vperm.slane %v1740_v5, %v3884_v27  ;;  %v1757_v57 = vrot.slane %v1750_v53, 4 }
 0x74a   : > { %v1728_v58 = vsel %vm834_vm1, %v1727_v54, %v1710_v41 }
 0x74b   : > { %v1734_v59 = vperm.slane %v1728_v58, %v3884_v27  ;;  %v1753_v60 = vrot.slane %v1738_v55, 4  ;;  %v1755_v62 = vrot.slane %v1746_v56, 4  ;;  %v1758_v0 = vsel %vm834_vm1, 0.0, %v1757_v57 }
 0x74c   : > { %v1770_v1 = vsel %vm834_vm1, %v1757_v57, %v1746_v56  ;;  %v1775_v3 = vrot.slane %v1758_v0, 4  ;;  %v3040_v58 = vpack.i.bf16 %v4147_v35, %v4134_v24 }
 0x74d   : > { %v1751_v4 = vrot.slane %v1734_v59, 4  ;;  %v1754_v9 = vsel %vm834_vm1, 0.0, %v1753_v60  ;;  %v1756_v10 = vsel %vm834_vm1, 0.0, %v1755_v62  ;;  %v1759_v11 = vsel %vm834_vm1, %v1753_v60, %v1734_v59 }
 0x74e   : > { %v1764_v12 = vrot.slane %v1754_v9, 4  ;;  %v1774_v14 = vperm.slane %v1770_v1, %v3868_v13  ;;  %v1776_v15 = vsel %vm834_vm1, %v1775_v3, %v1756_v10  ;;  %v1763_v16 = vperm.slane %v1759_v11, %v3868_v13 }
 0x74f   : > { %v1752_v17 = vsel %vm834_vm1, 0.0, %v1751_v4  ;;  %v1780_v18 = vperm.slane %v1776_v15, %v3868_v13  ;;  %v3035_v59 = vpack.i.bf16 %v4138_v8, %v4118_v63 }
 0x750   : > { %v1795_v19 = vrot.slane %v1774_v14, 4  ;;  %v1765_v20 = vsel %vm834_vm1, %v1764_v12, %v1752_v17  ;;  %v1783_v21 = vrot.slane %v1763_v16, 4 }
 0x751   : > { %v1769_v22 = vperm.slane %v1765_v20, %v3868_v13  ;;  %v1793_v23 = vrot.slane %v1780_v18, 4 }
 0x752   : > { %v1796_v52 = vsel %vm834_vm1, %v1780_v18, %v1795_v19 }
 0x753   : > { %v1784_v25 = vsel %vm834_vm1, %v1769_v22, %v1783_v21  ;;  %v1804_v26 = vperm.slane %v1796_v52, %v3884_v27  ;;  %v1781_v29 = vrot.slane %v1769_v22, 4  ;;  %v1794_v30 = vsel %vm834_vm1, %v1793_v23, %v1774_v14 }
 0x754   : > { %v1792_v31 = vperm.slane %v1784_v25, %v3884_v27  ;;  %v1800_v32 = vperm.slane %v1794_v30, %v3884_v27 }
 0x755   : > { %v1809_v34 = vrot.slane %v1804_v26, 4  ;;  %v1782_v61 = vsel %vm834_vm1, %v1781_v29, %v1763_v16 }
 0x756   : > { %v1788_v2 = vperm.slane %v1782_v61, %v3884_v27  ;;  %v1805_v36 = vrot.slane %v1800_v32, 4  ;;  %v1811_v37 = vrot.slane %v1792_v31, 4 }
 0x757   : > { %v1810_v38 = vsel %vm834_vm1, %v1809_v34, %v1792_v31 }
 0x758   : > { %2863 = vmatmul.msk.f32.vlgmr.msrb.gmra.mxu3 %vm1188_vm2, %v1810_v38  ;;  %v1806_v39 = vsel %vm834_vm1, %v1805_v36, %v1788_v2  ;;  %v1812_v40 = vsel %vm834_vm1, %v1804_v26, %v1811_v37  ;;  %v1807_v41 = vrot.slane %v1788_v2, 4 }
 0x759   : > { %2859 = vmatmul.msk.f32.vlgmr.msrb.gmra.mxu1 %vm1188_vm2, %v1806_v39  ;;  %2865 = vmatmul.msk.f32.vlgmr.msrb.gmra.mxu0 %vm1188_vm2, %v1812_v40 }
 0x75a   : > { %v1808_v42 = vsel %vm834_vm1, %v1800_v32, %v1807_v41 }
 0x75b   : > { %2861 = vmatmul.msk.f32.vlgmr.msrb.gmra.mxu2 %vm1188_vm2, %v1808_v42 }
 0x7d6   : > { %v2078_v43 = vpop.f32.mrf.mxu1  ;;  %v2156_v49 = vpop.f32.mrf.mxu0 }
 0x7d7   : > { %v2159_v44 = vmul.f32 5.656854, %v2078_v43  ;;  %v2162_v54 = vmul.f32 5.656854, %v2156_v49 }
 0x7d9   : > { %v2163_v45 = vadd.f32 %v2159_v44, %v3968_v28  ;;  %v2166_v56 = vadd.f32 %v2162_v54, %v3968_v28 }
 0x7db   : > { %v2130_v46 = vpop.f32.mrf.mxu3  ;;  %v2167_v47 = vsel %vm1188_vm2, %v2163_v45, -inf  ;;  %v2176_v57 = vsel %vm1188_vm2, %v2166_v56, -inf }
 0x7dc   : > { %v2161_v48 = vmul.f32 5.656854, %v2130_v46  ;;  %2168 = vmax.xlane.f32.xlu1 %v2167_v47 }
 0x7de   : > { %v2104_v50 = vpop.f32.mrf.mxu2  ;;  %v2165_v51 = vadd.f32 %v2161_v48, %v3968_v28 }
 0x7df   : > { %v2160_v53 = vmul.f32 5.656854, %v2104_v50 }
 0x7e0   : > { %v2173_v6 = vsel %vm1188_vm2, %v2165_v51, -inf }
 0x7e1   : > { %2174 = vmax.xlane.f32.xlu2 %v2173_v6  ;;  %v2164_v5 = vadd.f32 %v2160_v53, %v3968_v28 }
 0x7e3   : > { %v2170_v55 = vsel %vm1188_vm2, %v2164_v5, -inf }
 0x7e4   : > { %2171 = vmax.xlane.f32.xlu0 %v2170_v55 }
 0x7e9   : > { %2177 = vmax.xlane.f32.xlu2 %v2176_v57 }
 0x7f5   : > { %3041 = vrot.lane.b32.xlu1 %v3040_v58, %s3512_s22 }
 0x7f8   : > { %3036 = vrot.lane.b32.xlu0 %v3035_v59, %s3512_s22  ;;  %s2558_s22 = sshll.u32 %s4043_s18, 4  ;;  %s3380_s18 = scalar_lea.hbm %s4563_s21, 64  ;;  %s2559_s22 = int_to_ptr.vmem [resolvable:$true] %s2558_s22 }
 0x84f   : > { %v2169_v60 = vpop.xlane.xlu1 %2168 }
 0x850   : > { %v2179_v62 = vsub.f32 %v2163_v45, %v2169_v60 }
 0x852   : > { %v2183_v0 = vmul.f32 1.442695, %v2179_v62 }
 0x854   : > { %3072 = vpow2.f32 %v2183_v0  ;;  %v2175_v1 = vpop.xlane.xlu2 %2174 }
 0x855   : > { %v2181_v3 = vsub.f32 %v2165_v51, %v2175_v1 }
 0x857   : > { %v2187_v28 = vmul.f32 1.442695, %v2181_v3  ;;  %v2172_v4 = vpop.xlane.xlu0 %2171 }
 0x858   : > { %v2180_v9 = vsub.f32 %v2164_v5, %v2172_v4 }
 0x859   : > { %3074 = vpow2.f32 %v2187_v28 }
 0x85a   : > { %v4260_v10 = vpop.eup %3072  ;;  %v2185_v24 = vmul.f32 1.442695, %v2180_v9 }
 0x85b   : > { %v2191_v35 = vsel %vm1188_vm2, %v4260_v10, 0.0 }
 0x85c   : > { %v2178_v11 = vpop.xlane.xlu2 %2177  ;;  %2192 = vadd.xlane.f32.xlu0 %v2191_v35  ;;  %3076 = vpow2.f32 %v2185_v24 }
 0x85d   : > { %v2182_v63 = vsub.f32 %v2166_v56, %v2178_v11 }
 0x85f   : > { %v4264_v8 = vpop.eup %3074  ;;  %v2189_v14 = vmul.f32 1.442695, %v2182_v63 }
 0x860   : > { %v2197_v12 = vsel %vm1188_vm2, %v4264_v8, 0.0 }
 0x861   : > { %2198 = vadd.xlane.f32.xlu2 %v2197_v12  ;;  %3078 = vpow2.f32 %v2189_v14 }
 0x862   : > { %v4268_v15 = vpop.eup %3076 }
 0x863   : > { %v2194_v19 = vsel %vm1188_vm2, %v4268_v15, 0.0 }
 0x867   : > { %v3042_v16 = vpop.permute.xlu1 %3041  ;;  %v4272_v25 = vpop.eup %3078 }
 0x868   : > { %v3044_v17 = vunpack.i.h.bf16 %v3042_v16  ;;  %v3043_v18 = vunpack.i.l.bf16 %v3042_v16  ;;  %v2200_v36 = vsel %vm1188_vm2, %v4272_v25, 0.0 }
 0x869   : > { %2195 = vadd.xlane.f32.xlu2 %v2194_v19 }
 0x86a   : > { %v1957_v20 = vrot.slane %v3044_v17, 4  ;;  %v1945_v21 = vrot.slane %v3043_v18, 4  ;;  %v3037_v22 = vpop.permute.xlu0 %3036 }
 0x86b   : > { %v3039_v23 = vunpack.i.h.bf16 %v3037_v22  ;;  %v3038_v52 = vunpack.i.l.bf16 %v3037_v22 }
 0x86d   : > { %v1959_v26 = vrot.slane %v3039_v23, 4  ;;  %v1946_v29 = vsel %vm834_vm1, %v1945_v21, %v3038_v52  ;;  %v1947_v30 = vrot.slane %v3038_v52, 4  ;;  %v1958_v31 = vsel %vm834_vm1, %v1957_v20, %v3039_v23 }
 0x86e   : > { %v1952_v32 = vperm.slane %v1946_v29, %v3868_v13  ;;  %v1964_v34 = vperm.slane %v1958_v31, %v3868_v13 }
 0x86f   : > { %v1948_v61 = vsel %vm834_vm1, %v3043_v18, %v1947_v30  ;;  %v1960_v2 = vsel %vm834_vm1, %v3044_v17, %v1959_v26 }
 0x870   : > { %v1956_v37 = vperm.slane %v1948_v61, %v3868_v13  ;;  %v1968_v38 = vperm.slane %v1960_v2, %v3868_v13  ;;  %v1969_v39 = vrot.slane %v1964_v34, 4  ;;  %v1971_v40 = vrot.slane %v1952_v32, 4 }
 0x871   : > { %2201 = vadd.xlane.f32.xlu2 %v2200_v36 }
 0x872   : > { %v1970_v41 = vsel %vm834_vm1, %v1969_v39, %v1952_v32  ;;  %v1972_v42 = vsel %vm834_vm1, %v1964_v34, %v1971_v40  ;;  %v1981_v43 = vrot.slane %v1968_v38, 4  ;;  %v1983_v44 = vrot.slane %v1956_v37, 4 }
 0x873   : > { %v1976_v45 = vperm.slane %v1970_v41, %v3884_v27  ;;  %v1980_v46 = vperm.slane %v1972_v42, %v3884_v27 }
 0x874   : > { %v1982_v47 = vsel %vm834_vm1, %v1981_v43, %v1956_v37  ;;  %v1984_v48 = vsel %vm834_vm1, %v1968_v38, %v1983_v44 }
 0x875   : > { %v1988_v49 = vperm.slane %v1982_v47, %v3884_v27  ;;  %v1992_v50 = vperm.slane %v1984_v48, %v3884_v27  ;;  %v1993_v51 = vrot.slane %v1976_v45, 4  ;;  %v1995_v53 = vrot.slane %v1980_v46, 4 }
 0x877   : > { %v1996_v54 = vsel %vm834_vm1, 0.0, %v1995_v53  ;;  %v1997_v6 = vrot.slane %v1988_v49, 4  ;;  %v1999_v5 = vrot.slane %v1992_v50, 4  ;;  %v2001_v55 = vsel %vm834_vm1, %v1995_v53, %v1976_v45 }
 0x878   : > { %v2006_v56 = vrot.slane %v1996_v54, 4  ;;  %v1994_v57 = vsel %vm834_vm1, 0.0, %v1993_v51  ;;  %v2005_v59 = vperm.slane %v2001_v55, %v3868_v13 }
 0x879   : > { %v2000_v58 = vsel %vm834_vm1, 0.0, %v1999_v5  ;;  %v2012_v60 = vsel %vm834_vm1, %v1999_v5, %v1988_v49  ;;  %v1998_v3 = vsel %vm834_vm1, 0.0, %v1997_v6 }
 0x87a   : > { %v2017_v62 = vrot.slane %v2000_v58, 4  ;;  %v2007_v0 = vsel %vm834_vm1, %v2006_v56, %v1994_v57  ;;  %v2016_v1 = vperm.slane %v2012_v60, %v3868_v13  ;;  %v2025_v4 = vrot.slane %v2005_v59, 4 }
 0x87b   : > { %v2011_v28 = vperm.slane %v2007_v0, %v3868_v13 }
 0x87c   : > { %v2018_v9 = vsel %vm834_vm1, %v2017_v62, %v1998_v3  ;;  %v2037_v24 = vrot.slane %v2016_v1, 4 }
 0x87d   : > { %v2022_v35 = vperm.slane %v2018_v9, %v3868_v13  ;;  %v2026_v11 = vsel %vm834_vm1, %v2011_v28, %v2025_v4  ;;  %v2023_v63 = vrot.slane %v2011_v28, 4 }
 0x87e   : > { %v2034_v12 = vperm.slane %v2026_v11, %v3884_v27 }
 0x87f   : > { %v2038_v14 = vsel %vm834_vm1, %v2022_v35, %v2037_v24  ;;  %v2024_v16 = vsel %vm834_vm1, %v2023_v63, %v2005_v59  ;;  %v2035_v17 = vrot.slane %v2022_v35, 4 }
 0x880   : > { %v2046_v18 = vperm.slane %v2038_v14, %v3884_v27  ;;  %v2053_v19 = vrot.slane %v2034_v12, 4  ;;  %v2030_v20 = vperm.slane %v2024_v16, %v3884_v27 }
 0x881   : > { %v2036_v21 = vsel %vm834_vm1, %v2035_v17, %v2016_v1 }
 0x882   : > { %v2054_v22 = vsel %vm834_vm1, %v2046_v18, %v2053_v19  ;;  %v2042_v23 = vperm.slane %v2036_v21, %v3884_v27  ;;  %v2049_v52 = vrot.slane %v2030_v20, 4  ;;  %v2051_v26 = vrot.slane %v2046_v18, 4 }
 0x883   : > { %2298 = vmatpush.msra.mxu0 %v2054_v22 }
 0x884   : > { %v2050_v29 = vsel %vm834_vm1, %v2042_v23, %v2049_v52  ;;  %v2052_v30 = vsel %vm834_vm1, %v2051_v26, %v2034_v12  ;;  %v2047_v31 = vrot.slane %v2042_v23, 4 }
 0x885   : > { %2252 = vmatpush.msra.mxu2 %v2050_v29  ;;  %2275 = vmatpush.msra.mxu3 %v2052_v30 }
 0x886   : > { %v2048_v32 = vsel %vm834_vm1, %v2047_v31, %v2030_v20 }
 0x887   : > { %2229 = vmatpush.msra.mxu1 %v2048_v32 }
 0x8cf   : > { %v2193_v34 = vpop.xlane.xlu0 %2192 }
 0x8d0   : > { %3080 = vrcp.f32 %v2193_v34 }
 0x8d4   : > { %v2199_v61 = vpop.xlane.xlu2 %2198 }
 0x8d5   : > { %3082 = vrcp.f32 %v2199_v61 }
 0x8d6   : > { %v3081_v2 = vpop.eup %3080 }
 0x8d7   : > { %v2207_v36 = vmul.f32 %v3081_v2, %v4260_v10 }
 0x8d9   : > { %2485 = vst.msk [vmem:[%s4319_s17] sm:$0xff] %vm1188_vm2, %v2207_v36  ;;  %2866 = vmatmul.msk.f32.vlgmr.msra.gmra.mxu1 %vm1188_vm2, %v2207_v36 }
 0x8db   : > { %v3083_v37 = vpop.eup %3082 }
 0x8dc   : > { %v2209_v38 = vmul.f32 %v3083_v37, %v4264_v8  ;;  %v2196_v39 = vpop.xlane.xlu2 %2195 }
 0x8dd   : > { %3084 = vrcp.f32 %v2196_v39 }
 0x8de   : > { %2487 = vst.msk [vmem:[%s4319_s17 + $0x10] sm:$0xff] %vm1188_vm2, %v2209_v38  ;;  %2868 = vmatmul.msk.f32.vlgmr.msra.gmra.mxu3 %vm1188_vm2, %v2209_v38 }
 0x8e3   : > { %v3085_v10 = vpop.eup %3084 }
 0x8e4   : > { %v2208_v40 = vmul.f32 %v3085_v10, %v4268_v15  ;;  %v2202_v41 = vpop.xlane.xlu2 %2201 }
 0x8e5   : > { %3086 = vrcp.f32 %v2202_v41 }
 0x8e6   : > { %2486 = vst.msk [vmem:[%s4319_s17 + $0x8] sm:$0xff] %vm1188_vm2, %v2208_v40  ;;  %2867 = vmatmul.msk.f32.vlgmr.msra.gmra.mxu2 %vm1188_vm2, %v2208_v40 }
 0x8eb   : > { %v3087_v42 = vpop.eup %3086 }
 0x8ec   : > { %v2210_v43 = vmul.f32 %v3087_v42, %v4272_v25 }
 0x8ee   : > { %2488 = vst.msk [vmem:[%s4319_s17 + $0x18] sm:$0xff] %vm1188_vm2, %v2210_v43  ;;  %2869 = vmatmul.msk.f32.vlgmr.msra.gmra.mxu0 %vm1188_vm2, %v2210_v43 }
 0x956   : > { %v2231_v8 = vpop.f32.mrf.mxu1 }
 0x957   : > { %v2305_v45 = vrot.slane %v2231_v8, 4 }
 0x961   : > { %v2277_v44 = vpop.f32.mrf.mxu3 }
 0x962   : > { %v2303_v46 = vrot.slane %v2277_v44, 4  ;;  %v2306_v47 = vsel %vm834_vm1, %v2277_v44, %v2305_v45 }
 0x963   : > { %v2314_v48 = vperm.slane %v2306_v47, %v3868_v13 }
 0x964   : > { %v2304_v15 = vsel %vm834_vm1, %v2303_v46, %v2231_v8 }
 0x965   : > { %v2310_v51 = vperm.slane %v2304_v15, %v3868_v13  ;;  %v2341_v6 = vrot.slane %v2314_v48, 4  ;;  %v1689_v15 = vld [vmem:[#allocation14 + $0x18] sm:$0xff] }
 0x966   : > { %2446 = vmatpush.msrb.mxu1 %v1689_v15 }
 0x967   : > { %v2329_v56 = vrot.slane %v2310_v51, 4 }
 0x969   : > { %v2254_v49 = vpop.f32.mrf.mxu2 }
 0x96a   : > { %v2317_v50 = vrot.slane %v2254_v49, 4 }
 0x96b   : > { %v2300_v53 = vpop.f32.mrf.mxu0 }
 0x96c   : > { %v2315_v25 = vrot.slane %v2300_v53, 4  ;;  %v2318_v54 = vsel %vm834_vm1, %v2300_v53, %v2317_v50 }
 0x96d   : > { %v2326_v5 = vperm.slane %v2318_v54, %v3868_v13 }
 0x96e   : > { %v2316_v55 = vsel %vm834_vm1, %v2315_v25, %v2254_v49  ;;  %v1687_v49 = vld [vmem:[#allocation14 + $0x8] sm:$0xff] }
 0x96f   : > { %v2322_v57 = vperm.slane %v2316_v55, %v3868_v13  ;;  %v2339_v58 = vrot.slane %v2326_v5, 4  ;;  %v2342_v59 = vsel %vm834_vm1, %v2326_v5, %v2341_v6  ;;  %v3048_v5 = vld [vmem:[%s4486_s11] ss:$0 sm:$0xff] }
 0x970   : > { %v2350_v60 = vperm.slane %v2342_v59, %v3884_v27 }
 0x971   : > { %v2327_v62 = vrot.slane %v2322_v57, 4  ;;  %v2330_v0 = vsel %vm834_vm1, %v2322_v57, %v2329_v56  ;;  %v2340_v1 = vsel %vm834_vm1, %v2339_v58, %v2314_v48  ;;  %v1688_v48 = vld [vmem:[#allocation14 + $0x10] sm:$0xff] }
 0x972   : > { %v2338_v3 = vperm.slane %v2330_v0, %v3884_v27  ;;  %v2346_v28 = vperm.slane %v2340_v1, %v3884_v27  ;;  %v2357_v4 = vrot.slane %v2350_v60, 4  ;;  %2447 = vmatpush.msrb.mxu1 %v1688_v48 }
 0x973   : > { %v2328_v9 = vsel %vm834_vm1, %v2327_v62, %v2310_v51 }
 0x974   : > { %v2334_v24 = vperm.slane %v2328_v9, %v3884_v27  ;;  %v2353_v35 = vrot.slane %v2338_v3, 4  ;;  %v2355_v11 = vrot.slane %v2346_v28, 4  ;;  %v2358_v63 = vsel %vm834_vm1, 0.0, %v2357_v4  ;;  %2448 = vmatpush.msrb.mxu1 %v1687_v49  ;;  %v2492_v3 = vld [vmem:[#allocation16 + $0x18] sm:$0xff]  ;;  %v2489_v9 = vld [vmem:[#allocation16] sm:$0xff] }
 0x975   : > { %v2370_v12 = vsel %vm834_vm1, %v2357_v4, %v2346_v28  ;;  %v2375_v14 = vrot.slane %v2358_v63, 4  ;;  %2512 = vmatpush.msrb.mxu2 %v2492_v3  ;;  %v2491_v28 = vld [vmem:[#allocation16 + $0x10] sm:$0xff]  ;;  %v2490_v4 = vld [vmem:[#allocation16 + $0x8] sm:$0xff] }
 0x976   : > { %v2351_v16 = vrot.slane %v2334_v24, 4  ;;  %v2354_v17 = vsel %vm834_vm1, 0.0, %v2353_v35  ;;  %v2356_v18 = vsel %vm834_vm1, 0.0, %v2355_v11  ;;  %v2374_v19 = vperm.slane %v2370_v12, %v3868_v13 }
 0x977   : > { %v2364_v20 = vrot.slane %v2354_v17, 4  ;;  %v2359_v21 = vsel %vm834_vm1, %v2353_v35, %v2334_v24  ;;  %v2376_v22 = vsel %vm834_vm1, %v2375_v14, %v2356_v18  ;;  %2513 = vmatpush.msrb.mxu2 %v2491_v28  ;;  %v3049_v18 = vld [vmem:[%s4560_s12] ss:$0 sm:$0xff]  ;;  %s4564_s12 = sld [smem:[#allocation46_spill]] }
 0x978   : > { %v2352_v23 = vsel %vm834_vm1, 0.0, %v2351_v16  ;;  %v2363_v52 = vperm.slane %v2359_v21, %v3868_v13  ;;  %v2380_v26 = vperm.slane %v2376_v22, %v3868_v13  ;;  %v2395_v29 = vrot.slane %v2374_v19, 4 }
 0x979   : > { %v2365_v30 = vsel %vm834_vm1, %v2364_v20, %v2352_v23  ;;  %2514 = vmatpush.msrb.mxu2 %v2490_v4 }
 0x97a   : > { %v2369_v31 = vperm.slane %v2365_v30, %v3868_v13  ;;  %v2383_v32 = vrot.slane %v2363_v52, 4  ;;  %v2396_v34 = vsel %vm834_vm1, %v2380_v26, %v2395_v29  ;;  %v2393_v61 = vrot.slane %v2380_v26, 4 }
 0x97b   : > { %v2404_v2 = vperm.slane %v2396_v34, %v3884_v27  ;;  %2515 = vmatpush.msrb.mxu2 %v2489_v9 }
 0x97c   : > { %v2384_v36 = vsel %vm834_vm1, %v2369_v31, %v2383_v32  ;;  %v2381_v37 = vrot.slane %v2369_v31, 4  ;;  %v2394_v38 = vsel %vm834_vm1, %v2393_v61, %v2374_v19 }
 0x97d   : > { %v2392_v39 = vperm.slane %v2384_v36, %v3884_v27  ;;  %v2409_v10 = vrot.slane %v2404_v2, 4  ;;  %v2400_v40 = vperm.slane %v2394_v38, %v3884_v27 }
 0x97e   : > { %v2382_v41 = vsel %vm834_vm1, %v2381_v37, %v2363_v52 }
 0x97f   : > { %v2410_v13 = vsel %vm834_vm1, %v2409_v10, %v2392_v39  ;;  %v2388_v42 = vperm.slane %v2382_v41, %v3884_v27  ;;  %v2405_v43 = vrot.slane %v2400_v40, 4  ;;  %v2411_v46 = vrot.slane %v2392_v39, 4  ;;  %v1686_v27 = vld [vmem:[#allocation14] sm:$0xff] }
 0x980   : > { %2418 = vrot.lane.b32.xlu2 %v2410_v13, %s3519_s30  ;;  %2449 = vmatpush.msrb.mxu1 %v1686_v27  ;;  %s3374_s30 = sshra.s32 %s2561_s15, 4  ;;  %s3375_s30 = int_to_ptr.hbm [resolvable:$true] %s3374_s30 }
 0x981   : > { %v2407_v8 = vrot.slane %v2388_v42, 4  ;;  %v2406_v44 = vsel %vm834_vm1, %v2405_v43, %v2388_v42  ;;  %v2412_v47 = vsel %vm834_vm1, %v2404_v2, %v2411_v46  ;;  %p3381_p6 = scmp.lt.s32.totalorder %s3375_s30, %s4563_s21 }
 0x983   : > { %v2408_v45 = vsel %vm834_vm1, %v2400_v40, %v2407_v8 }
 0x984   : > { %2414 = vrot.lane.b32.xlu1 %v2408_v45, %s4516_s16  ;;  %s2574_s16 = scalar_lea.hbm %s4564_s12, %s2882_s13 }
 0x98c   : > { %2422 = vrot.lane.b32.xlu1 %v2412_v47, %s3521_s2  ;;  %s4561_s2 = sld [smem:[#allocation42_spill]] }
 0x992   : > { %v3050_v20 = vld [vmem:[%s4561_s2] ss:$0 sm:$0xff]  ;;  %s3376_s2 = scalar_lea.hbm %s3375_s30, 32 }
 0x993   : > { %p3377_p13 = scmp.ne.s32.totalorder %s3375_s30, %s3376_s2  ;;  %p3382_p11 = scmp.lt.s32.totalorder %s3380_s18, %s3376_s2 }
 0x995   : > { %p3378_p7 = pnand %p3377_p13, %p3704_p0  ;;  %p3383_p12 = por %p3382_p11, %p3381_p6 }
 0x997   : > { %p3379_p10 = pneg %p3378_p7 }
 0x999   : > { %p3384_p3 = pnand %p3383_p12, %p3379_p10 }
 0x9da   : > { %v2419_v53 = vpop.permute.xlu2 %2418 }
 0x9f6   : > { %v2415_v50 = vpop.permute.xlu1 %2414 }
 0x9f7   : > { %v2425_v51 = vsel %vm1188_vm2, %v2406_v44, %v2415_v50 }
 0x9f8   : > { %v2426_v54 = vsel %vm1560_vm3, %v2425_v51, %v2419_v53 }
 0x9fe   : > { %v2423_v25 = vpop.permute.xlu1 %2422 }
 0x9ff   : > { %v2427_v6 = vsel %vm1562_vm4, %v2426_v54, %v2423_v25 }
 0xa00   : > { %2870 = vmatmul.msk.f32.vlgmr.msrb.gmra.mxu1 %vm792_vm0, %v2427_v6 }
 0xa7d   : > { %v2451_v55 = vpop.f32.mrf.mxu1 }
 0xa7e   : > { %v2452_v56 = vadd.f32 %v3048_v5, %v2451_v55 }
 0xa80   : > { %v2454_v57 = vadd.f32 %v2452_v56, %v4192_v33 }
 0xa82   : > { %v2455_v58 = vsel %vm792_vm0, %v2454_v57, 0.0 }
 0xa83   : > { %2456 = vadd.xlane.f32.xlu1 %v2455_v58 }
 0xaf6   : > { %v2457_v59 = vpop.xlane.xlu1 %2456 }
 0xaf7   : > { %v2458_v60 = vmul.f32 %v2457_v59, %v4114_v7 }
 0xaf9   : > { %v2459_v62 = vsub.f32 %v2454_v57, %v2458_v60 }
 0xafb   : > { %v2460_v0 = vmul.f32 %v2459_v62, %v2459_v62 }
 0xafd   : > { %v2461_v1 = vsel %vm792_vm0, %v2460_v0, 0.0 }
 0xafe   : > { %2462 = vadd.xlane.f32.xlu2 %v2461_v1 }
 0xb71   : > { %v2463_v33 = vpop.xlane.xlu2 %2462 }
 0xb72   : > { %v2464_v24 = vmul.f32 %v2463_v33, %v4114_v7 }
 0xb74   : > { %v2465_v35 = vadd.f32 1e-06, %v2464_v24 }
 0xb76   : > { %3088 = vrsqrt.f32 %v2465_v35  ;;  %vm2472_vm10 = vweird.f32 %v2465_v35 }
 0xb7c   : > { %v3089_v11 = vpop.eup %3088 }
 0xb7d   : > { %v2467_v63 = vmul.f32 %v3089_v11, %v2465_v35  ;;  %vm2473_vm9 = vweird.f32 %v3089_v11 }
 0xb7e   : > { %vm2474_vm11 = vmor %vm2472_vm10, %vm2473_vm9 }
 0xb7f   : > { %v2468_v12 = vmul.f32 %v3089_v11, %v2467_v63 }
 0xb81   : > { %v2469_v14 = vmul.f32 0.5, %v2468_v12 }
 0xb83   : > { %v2470_v16 = vsub.f32 1.5, %v2469_v14 }
 0xb85   : > { %v2471_v17 = vmul.f32 %v3089_v11, %v2470_v16 }
 0xb87   : > { %v2475_v19 = vsel %vm2474_vm11, %v3089_v11, %v2471_v17 }
 0xb88   : > { %v2476_v7 = vmul.f32 %v2475_v19, %v2459_v62 }
 0xb8a   : > { %v2480_v21 = vmul.f32 %v3049_v18, %v2476_v7 }
 0xb8c   : > { %v2484_v22 = vadd.f32 %v3050_v20, %v2480_v21 }
 0xb8e   : > { %2871 = vmatmul.msk.f32.vlgmr.msrb.gmra.mxu2 %vm792_vm0, %v2484_v22 }
 0xb8f   : > { %3387 = shalt.err (!%p3384_p3)
}
 0xb90   : > { %s3523_s8 = smov 128   ;;  %s4565_s13 = smov 8  }
 0xb91   : > { %2915 = dma.vmem_to_hbm [thread:$0]  (%p3704_p0), %s2559_s22, 512, %s2561_s15, %s4408_s23, %s3523_s8, %s3523_s8, %s4565_s13  }
 0xb92   : > { %s2575_s27 = sshll.u32 %s4319_s17, 4  ;;  %s2577_s26 = sshll.u32 %s2574_s16, 4  ;;  %s2576_s27 = int_to_ptr.vmem [resolvable:$true] %s2575_s27  ;;  %s2578_s26 = int_to_ptr.hbm [resolvable:$true] %s2577_s26 }
 0xb93   : > { %s3402_s0 = sshra.s32 %s2578_s26, 4  ;;  %s3408_s4 = scalar_lea.hbm %s4564_s12, 64  ;;  %s3403_s0 = int_to_ptr.hbm [resolvable:$true] %s3402_s0 }
 0xb94   : > { %s3404_s1 = scalar_lea.hbm %s3403_s0, 32  ;;  %p3409_p4 = scmp.lt.s32.totalorder %s3403_s0, %s4564_s12 }
 0xb95   : > { %p3405_p8 = scmp.ne.s32.totalorder %s3403_s0, %s3404_s1  ;;  %p3410_p1 = scmp.lt.s32.totalorder %s3408_s4, %s3404_s1 }
 0xb97   : > { %p3406_p9 = pnand %p3405_p8, %p3704_p0  ;;  %p3411_p13 = por %p3410_p1, %p3409_p4 }
 0xb99   : > { %p3407_p2 = pneg %p3406_p9 }
 0xb9b   : > { %p3412_p7 = pnand %p3411_p13, %p3407_p2 }
 0xb9d   : > { %3415 = shalt.err (!%p3412_p7)
}
 0xb9e   : > { %2916 = dma.vmem_to_hbm [thread:$0]  (%p3704_p0), %s2576_s27, 512, %s2578_s26, %s4408_s23, %s3523_s8, %s3523_s8, %s4565_s13  }
 0xb9f   : > { %s2875_s16 = sshll.u32 %s3643_s20, 3  ;;  %s4566_s15 = sld [smem:[#allocation44_spill]] }
 0xba0   : > { %s4567_s1 = sld [smem:[#allocation43_spill]]  ;;  %s770_s4 = scalar_lea.vmem [#allocation17], %s3814_s19 }
 0xba1   : > { %s2544_s18 = sshll.u32 %s770_s4, 4  ;;  %s2522_s23 = scalar_lea.sflag [#allocation4], %s3811_s24  ;;  %s2545_s18 = int_to_ptr.vmem [resolvable:$true] %s2544_s18 }
 0xba5   : > { %s2542_s30 = scalar_lea.hbm %s4566_s15, %s2875_s16  ;;  %s3436_s19 = scalar_lea.hbm %s4566_s15, 16 }
 0xba6   : > { %v3051_v23 = vld [vmem:[%s4567_s1] ss:$0 sm:$0xff]  ;;  %s2546_s3 = sshll.u32 %s2542_s30, 4  ;;  %s2547_s3 = int_to_ptr.hbm [resolvable:$true] %s2546_s3 }
 0xba7   : > { %s3430_s20 = sshra.s32 %s2547_s3, 4  ;;  %s3431_s20 = int_to_ptr.hbm [resolvable:$true] %s3430_s20 }
 0xba8   : > { %s3432_s8 = scalar_lea.hbm %s3431_s20, 8  ;;  %p3437_p12 = scmp.lt.s32.totalorder %s3431_s20, %s4566_s15 }
 0xba9   : > { %p3433_p10 = scmp.ne.s32.totalorder %s3431_s20, %s3432_s8  ;;  %p3438_p3 = scmp.lt.s32.totalorder %s3436_s19, %s3432_s8 }
 0xbab   : > { %p3434_p6 = pnand %p3433_p10, %p3704_p0  ;;  %p3439_p8 = por %p3438_p3, %p3437_p12 }
 0xbad   : > { %p3435_p11 = pneg %p3434_p6 }
 0xbaf   : > { %p3440_p9 = pnand %p3439_p8, %p3435_p11 }
 0xc11   : > { %v2517_v52 = vpop.f32.mrf.mxu2 }
 0xc12   : > { %v2518_v26 = vadd.f32 %v3051_v23, %v2517_v52 }
 0xc14   : > { %2520 = vst.msk [vmem:[%s770_s4] sm:$0xff] %vm792_vm0, %v2518_v26 }
 0xc15   : > { %3443 = shalt.err (!%p3440_p9)
}
 0xc16   : > { %2914 = dma.vmem_to_hbm [thread:$0]  (%p3704_p0), %s2545_s18, 128, %s2547_s3, %s2522_s23  }
 0xc17 PF: > { %s4568_s24 = sld [smem:[#allocation28_spill]] }
 0xc18   : > { %s4570_s22 = sld [smem:[#allocation29_spill]] }
 0xc1d   : > { %s2592_s30 = sand.u32 1, %s4568_s24  }
 0xc1e   : > { %p4571_p2 = scmp.ge.s32.totalorder %s4570_s22, 2  ;;  %s2593_s2 = scalar_lea.sflag [#allocation4], %s2592_s30 }
 0xc20   : > { %p2950_p4 = pnand %p4571_p2, %p3712_p5 }
 0xc22   : > { %p2951_p1 = pneg %p2950_p4 }
 0xc24   : > { %3481 = dma.done.wait (%p2951_p1), %s2593_s2, 128  }
 0xc25   : > { %3483 = vsyncadd (%p2951_p1), %s2593_s2, 4294967168  ;;  %s4572_s0 = sadd.s32 4294967294, %s4570_s22  }
 0xc26   : > { %s2602_s1 = sand.u32 1, %s4572_s0  }
 0xc27   : > { %s2603_s4 = scalar_lea.sflag [#allocation19], %s2602_s1 }
 0xc28   : > { %3485 = dma.done.wait (%p2951_p1), %s2603_s4, 1024  }
 0xc29   : > { %3487 = vsyncadd (%p2951_p1), %s2603_s4, 4294966272  ;;  %s4573_s30 = sld [smem:[#allocation30_spill]]  ;;  %s4575_s27 = smov %s3494_s28 }
 0xc2a   : > { %s4574_s25 = sld [smem:[#allocation31_spill]]  ;;  %s4576_s28 = smov %s3498_s29 }
 0xc2f   : > { %p41_p0 = scmp.ge.s32.totalorder %s4573_s30, 4  }
 0xc30   : > { %s4577_s29 = smov %s4574_s25 }
 0xc31   :  { %43 = sbr.rel (!%p41_p0) target bundleno = 26 (0x1a), region = 209 }
 0xc36   :  { %2619 = vsyncpa [#allocation3], 1 }
 0xc37   :  { %2621 = vsyncpa [#allocation3 + $0x1], 1 }
 0xc38   :  { %2622 = vsyncpa [#allocation6], 1 }
 0xc39   :  { %2624 = vsyncpa [#allocation6 + $0x1], 1 }
 0xc3a   :  { %2625 = vsyncpa [#allocation9], 1 }
 0xc3b   :  { %2626 = vsyncpa [#allocation12], 1 }
 0xc3c   :  { %2627 = vsyncpa [#allocation15], 1 }
 0xc3d   :  { %2628 = vsyncpa [#allocation4], 1 }
 0xc3e   :  { %2630 = vsyncpa [#allocation4 + $0x1], 1 }
 0xc3f   :  { %2631 = vsyncpa [#allocation19], 1 }
 0xc40   :  { %2633 = vsyncpa [#allocation19 + $0x1], 1 }

</bundles_post_ra>
